<compile_context>
chip_gen: v7x
topology: tpu7x:2x2x1
jax: 0.10.0
libtpu: 0.0.40
codegen_flags: <defaults>
</compile_context>

<pallas_src>
import functools

import jax
import jax.numpy as jnp
from jax.experimental import pallas as pl
from jax.experimental.pallas import tpu as pltpu


def _round_up(x, m):
    return (x + m - 1) // m * m


def _cdiv(a, b):
    return (a + b - 1) // b


def _linear_kernel_f32(x_ref, w_ref, b_ref, o_ref):
    # grid = (M tiles, N tiles, K tiles); K is the reduction ("SumReduce")
    # axis.  Output block index is K-invariant, so the f32 output tile stays
    # resident in VMEM across K and we accumulate directly into it.
    k = pl.program_id(2)
    p = jnp.dot(x_ref[...], w_ref[...], preferred_element_type=jnp.float32)

    @pl.when(k == 0)
    def _():
        # bias fused with the first partial product (added exactly once).
        o_ref[...] = jnp.broadcast_to(b_ref[...], o_ref.shape) + p

    @pl.when(k != 0)
    def _():
        o_ref[...] += p


def _linear_kernel_acc(x_ref, w_ref, b_ref, o_ref, acc_ref):
    # Variant for non-f32 output dtypes: accumulate in an f32 VMEM scratch.
    k = pl.program_id(2)
    p = jnp.dot(x_ref[...], w_ref[...], preferred_element_type=jnp.float32)

    @pl.when(k == 0)
    def _():
        acc_ref[...] = jnp.broadcast_to(b_ref[...], acc_ref.shape) + p

    @pl.when(k != 0)
    def _():
        acc_ref[...] += p

    @pl.when(k == pl.num_programs(2) - 1)
    def _():
        o_ref[...] = acc_ref[...].astype(o_ref.dtype)


def _vmem_capacity_bytes():
    try:
        return int(pltpu.get_tpu_info().vmem_capacity_bytes)
    except Exception:
        # Conservative fallback: assume the smallest VMEM (v7x, 64 MiB/TC).
        return 64 * 1024 * 1024


def _choose_tiles(M, N, K, in_bytes, out_bytes, use_scratch, budget):
    """Pick (tm, tn, tk) that fit the VMEM budget (double-buffered)."""
    # Sublane packing multiple of the input dtype (f32: 8, bf16: 16, 8-bit: 32).
    sub = {1: 32, 2: 16}.get(in_bytes, 8)
    Ms = _round_up(M, sub)
    Np = _round_up(N, 128)
    Kp = _round_up(K, 128)

    # Batch-resident M when small: the weight then streams from HBM exactly
    # once (weight traffic is the dominant HBM term for Linear layers).
    tm = Ms if Ms <= 512 else 512
    # Large lane-dense N tile and large K tile: fewer grid steps, fewer
    # accumulator read-modify-write passes per unit of MXU work.
    tn = min(1024, Np)
    tk = min(2048, Kp)

    # Megacore (v7x has 2 TensorCores): if the parallel (M x N) grid would be
    # 1x1, split N into >= 2 tiles so both cores get work.  Harmless on 1-TC
    # chips (v5e/v6e).
    if Ms <= 512 and tn >= Np and Np >= 256:
        tn = _round_up(_cdiv(Np, 2), 128)

    def need(tm_, tn_, tk_):
        b = 2 * tm_ * tk_ * in_bytes        # x tile, double-buffered
        b += 2 * tk_ * tn_ * in_bytes       # W.T tile, double-buffered
        b += 2 * tm_ * tn_ * out_bytes      # output tile
        b += 2 * tn_ * 4                    # bias tile
        if use_scratch:
            b += tm_ * tn_ * 4              # f32 accumulator scratch
        return b

    # Shrink-to-fit: tk first (only affects reduction-step count), then tn,
    # then tm, keeping (8,128)/dtype alignment.
    while need(tm, tn, tk) > budget and tk > 256:
        tk = max(256, _round_up(tk // 2, 128))
    while need(tm, tn, tk) > budget and tn > 256:
        tn = max(256, _round_up(tn // 2, 128))
    while need(tm, tn, tk) > budget and tm > sub:
        tm = max(sub, _round_up(tm // 2, sub))

    return tm, tn, tk, need(tm, tn, tk)


def distributed_linear(x, weight, bias, *, compute_dtype=None,
                       transposed_weight=False):
    """y = x @ weight.T + bias  (forward of DistributedLinear, active path).

    x:      [batch, in_features]
    weight: [out_features, in_features]  (torch layout), or [in_features,
            out_features] if transposed_weight=True (avoids the per-call
            transpose of the largest operand).
    bias:   [out_features]
    compute_dtype: dtype fed to the MXU (e.g. jnp.bfloat16 on v6e/v7x);
            accumulation is always f32, output keeps x.dtype.
    """
    M, K = x.shape
    if transposed_weight:
        K2, N = weight.shape
    else:
        N, K2 = weight.shape
    assert K == K2, "in_features mismatch between x and weight"

    out_dtype = x.dtype
    if compute_dtype is None:
        compute_dtype = x.dtype
    compute_dtype = jnp.dtype(compute_dtype)
    in_bytes = compute_dtype.itemsize
    out_bytes = jnp.dtype(out_dtype).itemsize
    use_scratch = jnp.dtype(out_dtype) != jnp.dtype(jnp.float32)

    # Generation-aware VMEM budget (v5e/v6e: 128 MiB, v7x: 64 MiB per TC).
    vmem_cap = _vmem_capacity_bytes()
    budget = min(int(0.60 * vmem_cap), 96 * 1024 * 1024)
    tm, tn, tk, need_bytes = _choose_tiles(
        M, N, K, in_bytes, out_bytes, use_scratch, budget)

    Mp, Np, Kp = _round_up(M, tm), _round_up(N, tn), _round_up(K, tk)

    # Lane-dense [K, N] RHS; cast to the MXU feed dtype.  Under jit the
    # transpose / cast / pad are fused by XLA; for production, store the
    # weight as [K, N] and pass transposed_weight=True.
    w_kn = weight if transposed_weight else weight.T
    w_kn = w_kn.astype(compute_dtype)
    xp = x.astype(compute_dtype)
    if (Mp, Kp) != (M, K):
        xp = jnp.pad(xp, ((0, Mp - M), (0, Kp - K)))
    if (Kp, Np) != (K, N):
        w_kn = jnp.pad(w_kn, ((0, Kp - K), (0, Np - N)))
    bp = bias.astype(jnp.float32)
    if Np != N:
        bp = jnp.pad(bp, (0, Np - N))
    bp = bp.reshape(1, Np)

    grid = (Mp // tm, Np // tn, Kp // tk)

    kernel = _linear_kernel_acc if use_scratch else _linear_kernel_f32
    scratch = [pltpu.VMEM((tm, tn), jnp.float32)] if use_scratch else []

    vmem_limit = max(32 * 1024 * 1024,
                     min(int(0.90 * vmem_cap), need_bytes + 16 * 1024 * 1024))

    cost = pl.CostEstimate(
        flops=2 * M * N * K,
        bytes_accessed=in_bytes * (M * K + K * N) + out_bytes * M * N + 4 * N,
        transcendentals=0,
    )

    yp = pl.pallas_call(
        kernel,
        out_shape=jax.ShapeDtypeStruct((Mp, Np), out_dtype),
        grid_spec=pltpu.PrefetchScalarGridSpec(
            num_scalar_prefetch=0,
            grid=grid,
            in_specs=[
                pl.BlockSpec((tm, tk), lambda i, j, k: (i, k)),   # x tile
                pl.BlockSpec((tk, tn), lambda i, j, k: (k, j)),   # W.T tile
                pl.BlockSpec((1, tn), lambda i, j, k: (0, j)),    # bias tile
            ],
            out_specs=pl.BlockSpec((tm, tn), lambda i, j, k: (i, j)),
            scratch_shapes=scratch,
        ),
        compiler_params=pltpu.CompilerParams(
            dimension_semantics=("parallel", "parallel", "arbitrary"),
            vmem_limit_bytes=int(vmem_limit),
        ),
        cost_estimate=cost,
    )(xp, w_kn, bp)

    if (Mp, Np) == (M, N):
        return yp
    return yp[:M, :N]


if __name__ == "__main__":
    # Small shapes: batch=8, in_features=1024, out_features=512.
    batch, in_features, out_features = 8, 1024, 512

    key = jax.random.PRNGKey(0)
    kx, kw, kb = jax.random.split(key, 3)

    x = jax.random.normal(kx, (batch, in_features), dtype=jnp.float32)
    # deterministic torch.nn.Linear-style init (uniform in +-1/sqrt(fan_in))
    bound = 1.0 / (in_features ** 0.5)
    weight = jax.random.uniform(
        kw, (out_features, in_features), dtype=jnp.float32,
        minval=-bound, maxval=bound)
    bias = jax.random.uniform(
        kb, (out_features,), dtype=jnp.float32, minval=-bound, maxval=bound)

    # jit the wrapper so the weight transpose/pad/cast fuse into surrounding
    # XLA ops instead of an extra per-call HBM round-trip.
    fwd_f32 = jax.jit(distributed_linear)
    fwd_bf16 = jax.jit(functools.partial(distributed_linear,
                                         compute_dtype=jnp.bfloat16))

    y = jax.block_until_ready(fwd_f32(x, weight, bias))
    y_bf16 = jax.block_until_ready(fwd_bf16(x, weight, bias))

    y_ref = jnp.dot(x, weight.T, precision=jax.lax.Precision.HIGHEST) + bias
    assert y.shape == (batch, out_features)
    assert jnp.allclose(y, y_ref, atol=2e-3, rtol=2e-3), \
        "f32 path mismatch vs reference"
    assert jnp.allclose(y_bf16, y_ref, atol=3e-2, rtol=3e-2), \
        "bf16-compute path mismatch vs reference"

    # TODO(synk): the real module's MPI Broadcast/SumReduce across inactive
    # partitions (P_x/P_y/P_w inactive -> return input.clone()) has no
    # single-device Pallas equivalent; only the active-math path is modeled.
    print("KERNEL_OK")
</pallas_src>

<mosaic_0001>
module attributes {stable_mosaic.version = 11 : i64} {
  func.func @_linear_kernel_f32(%arg0: i32, %arg1: i32, %arg2: i32, %arg3: memref<8x1024xf32, #tpu.memory_space<vmem>>, %arg4: memref<1024x256xf32, #tpu.memory_space<vmem>>, %arg5: memref<1x256xf32, #tpu.memory_space<vmem>>, %arg6: memref<8x256xf32, #tpu.memory_space<vmem>>) attributes {dimension_semantics = [#tpu.dimension_semantics<parallel>, #tpu.dimension_semantics<parallel>, #tpu.dimension_semantics<arbitrary>], iteration_bounds = array<i64: 1, 2, 1>, scalar_prefetch = 0 : i64, scratch_operands = 0 : i64, tpu.core_type = #tpu.core_type<tc>, window_params = [{transform_indices = @transform_0, window_bounds = array<i64: 8, 1024>}, {transform_indices = @transform_1, window_bounds = array<i64: 1024, 256>}, {transform_indices = @transform_2, window_bounds = array<i64: 1, 256>}, {transform_indices = @transform_3, window_bounds = array<i64: 8, 256>}]} {
    %c0 = arith.constant 0 : index
    %c0_0 = arith.constant 0 : index
    %0 = vector.load %arg3[%c0, %c0_0] : memref<8x1024xf32, #tpu.memory_space<vmem>>, vector<8x1024xf32>
    %c0_1 = arith.constant 0 : index
    %c0_2 = arith.constant 0 : index
    %1 = vector.load %arg4[%c0_1, %c0_2] : memref<1024x256xf32, #tpu.memory_space<vmem>>, vector<1024x256xf32>
    %cst = arith.constant dense<0.000000e+00> : vector<8x256xf32>
    %2 = tpu.matmul %0, %1, %cst {dimension_numbers = #tpu.dot_dimension_numbers<[1], [0], [0], [1], [0, 0, 1, 1], [], []>} : vector<8x1024xf32>, vector<1024x256xf32>, vector<8x256xf32> -> vector<8x256xf32>
    %c0_i32 = arith.constant 0 : i32
    %3 = arith.cmpi eq, %arg2, %c0_i32 : i32
    %4 = arith.extui %3 : i1 to i32
    %c0_i32_3 = arith.constant 0 : i32
    %5 = arith.cmpi ne, %4, %c0_i32_3 : i32
    scf.if %5 {
      %c0_6 = arith.constant 0 : index
      %c0_7 = arith.constant 0 : index
      %9 = vector.load %arg5[%c0_6, %c0_7] : memref<1x256xf32, #tpu.memory_space<vmem>>, vector<1x256xf32>
      %10 = vector.shape_cast %9 : vector<1x256xf32> to vector<1x256xf32>
      %11 = vector.broadcast %10 : vector<1x256xf32> to vector<8x256xf32>
      %12 = arith.addf %11, %2 : vector<8x256xf32>
      %c0_8 = arith.constant 0 : index
      %c0_9 = arith.constant 0 : index
      %13 = vector.load %arg6[%c0_8, %c0_9] : memref<8x256xf32, #tpu.memory_space<vmem>>, vector<8x256xf32>
      tpu.vector_store %arg6[%c0_8, %c0_9], %12 {strides = array<i32>} : memref<8x256xf32, #tpu.memory_space<vmem>>, vector<8x256xf32>,
    } else {
    }
    %c0_i32_4 = arith.constant 0 : i32
    %6 = arith.cmpi ne, %arg2, %c0_i32_4 : i32
    %7 = arith.extui %6 : i1 to i32
    %c0_i32_5 = arith.constant 0 : i32
    %8 = arith.cmpi ne, %7, %c0_i32_5 : i32
    scf.if %8 {
      %c0_6 = arith.constant 0 : index
      %c0_7 = arith.constant 0 : index
      %9 = vector.load %arg6[%c0_6, %c0_7] : memref<8x256xf32, #tpu.memory_space<vmem>>, vector<8x256xf32>
      %10 = arith.addf %9, %2 : vector<8x256xf32>
      %c0_8 = arith.constant 0 : index
      %c0_9 = arith.constant 0 : index
      %11 = vector.load %arg6[%c0_8, %c0_9] : memref<8x256xf32, #tpu.memory_space<vmem>>, vector<8x256xf32>
      tpu.vector_store %arg6[%c0_8, %c0_9], %10 {strides = array<i32>} : memref<8x256xf32, #tpu.memory_space<vmem>>, vector<8x256xf32>,
    } else {
    }
    return
  }
  func.func @transform_0(%arg0: i32, %arg1: i32, %arg2: i32) -> (i32, i32) {
    %c0_i32 = arith.constant 0 : i32
    return %arg0, %arg2 : i32, i32
  }
  func.func @transform_1(%arg0: i32, %arg1: i32, %arg2: i32) -> (i32, i32) {
    %c0_i32 = arith.constant 0 : i32
    return %arg2, %arg1 : i32, i32
  }
  func.func @transform_2(%arg0: i32, %arg1: i32, %arg2: i32) -> (i32, i32) {
    %c0_i32 = arith.constant 0 : i32
    %c0_i32_0 = arith.constant 0 : i32
    return %c0_i32, %arg1 : i32, i32
  }
  func.func @transform_3(%arg0: i32, %arg1: i32, %arg2: i32) -> (i32, i32) {
    %c0_i32 = arith.constant 0 : i32
    return %arg0, %arg1 : i32, i32
  }
}

</mosaic_0001>

<bundles_post_ra>
// kernel: distributed_linear.1
= control target key start
LH: loop header
LB: loop body
LE: loop exit
PB: predicated region body
PF: predicated region fallthrough
CT: control target
= control target key end

     0   :  { %8 = vsyncpa [#allocation4], 0  ;;  %s2851_s0 = inlined_call_operand.vmem [shape: f32[8,1024], index: 0, kind: input, shape index: {}]   ;;  %s2852_s1 = inlined_call_operand.vmem [shape: f32[1024,512], index: 1, kind: input, shape index: {}]   ;;  %s2853_s2 = inlined_call_operand.vmem [shape: f32[1,512], index: 2, kind: input, shape index: {}]   ;;  %s2854_s3 = inlined_call_operand.hbm [shape: f32[8,512], index: 3, kind: output, shape index: {}]  }
   0x1   :  { %10 = vsyncpa [#allocation4 + $0x1], 0  ;;  %s1927_s12 = smov 0   ;;  %s1929_s13 = smov 0  }
   0x2   :  { %s1931_s14 = smov 0   ;;  %s1933_s15 = smov 0  }
   0x3   :  { %s1935_s16 = smov 0   ;;  %s1937_s17 = smov 0  }
   0x4 LB: > { %s1490_s18 = sadd.s32 4294967295, %s1904_s17   ;;  %s1491_s19 = sadd.s32 4294967294, %s1904_s17   ;;  %s1904_s17 = sphi %s1937_s17, %s16_s17   ;;  %s1900_s16 = sphi %s1935_s16, %s2861_s16   ;;  %s1896_s15 = sphi %s1933_s15, %s2860_s15   ;;  %s1892_s14 = sphi %s1931_s14, %s2859_s14   ;;  %s1888_s13 = sphi %s1929_s13, %s2858_s13   ;;  %s1884_s12 = sphi %s1927_s12, %s2857_s12  }
   0x5   : > { %s31_s20 = sadd.s32 1, %s1900_s16  ;;  %s72_s21 = sadd.s32 1, %s1892_s14 }
   0x6   : > { %p33_p0 = scmp.ge.s32.totalorder %s31_s20, 2  ;;  %p79_p1 = scmp.ne.s32.totalorder %s1892_s14, %s1888_s13 }
   0x7   : > { %p80_p2 = scmp.eq.s32.totalorder %s1904_s17, 0  ;;  %p137_p3 = scmp.eq.s32.totalorder %s1490_s18, 1 }
   0x8   : > { %s2863_s20 = smov (%p33_p0, %s31_s20), 0  ;;  %p142_p6 = scmp.ne.s32.totalorder %s1888_s13, %s1884_s12 }
   0x9   : > { %p81_p4 = por %p80_p2, %p79_p1  ;;  %p1966_p5 = por %p137_p3, %p79_p1 }
   0xa   : > { %s68_s23 = ssub.s32 %s1900_s16, %s2863_s20  ;;  %p143_p8 = scmp.eq.s32.totalorder %s1491_s19, 1 }
   0xb   : > { %p70_p7 = scmp.eq.s32.totalorder %s68_s23, 0  ;;  %p1494_p10 = scmp.ge.s32.totalorder %s1904_s17, 2 }
   0xc   : > { %p1977_p9 = por %p143_p8, %p142_p6 }
   0xd   : > { %s1975_s24 = scalar_select %p70_p7, %s1892_s14, %s72_s21  }
   0xe   : > { %172 = sbr.rel (%p1494_p10) target bundleno = 153 (0x99), region = 20 }
  0x15   : > { %175 = sbr.rel (!%p81_p4) target bundleno = 153 (0x99), region = 24  ;;  %s177_s26 = sand.u32 (%p81_p4), 1, %s1892_s14  }
  0x16   : > { %s1507_s27 = sshll.u32 (%p81_p4), %s1900_s16, 4  ;;  %s1495_s28 = sshll.u32 (%p81_p4), %s177_s26, 11 }
  0x17   : > { %s1989_s4 = scalar_lea.vmem (%p81_p4), %s2852_s1, %s1507_s27  ;;  %s1994_s5 = scalar_lea.vmem (%p81_p4), [#allocation2], %s1495_s28 }
  0x18   : > { %v198_v0 = vld [vmem:[%s1989_s4] sm:$0xff] (%p81_p4)  ;;  %v200_v1 = vld [vmem:[%s1989_s4 + $0x8] sm:$0xff] (%p81_p4) }
  0x19   : > { %v202_v2 = vld [vmem:[%s1989_s4 + $0x20] sm:$0xff] (%p81_p4)  ;;  %199 = vst [vmem:[%s1994_s5] sm:$0xff] (%p81_p4), %v198_v0  ;;  %201 = vst [vmem:[%s1994_s5 + $0x8] sm:$0xff] (%p81_p4), %v200_v1  ;;  %v204_v3 = vld [vmem:[%s1989_s4 + $0x28] sm:$0xff] (%p81_p4) }
  0x1a   : > { %203 = vst [vmem:[%s1994_s5 + $0x10] sm:$0xff] (%p81_p4), %v202_v2  ;;  %v206_v4 = vld [vmem:[%s1989_s4 + $0x40] sm:$0xff] (%p81_p4)  ;;  %v208_v5 = vld [vmem:[%s1989_s4 + $0x48] sm:$0xff] (%p81_p4)  ;;  %205 = vst [vmem:[%s1994_s5 + $0x18] sm:$0xff] (%p81_p4), %v204_v3 }
  0x1b   : > { %207 = vst [vmem:[%s1994_s5 + $0x20] sm:$0xff] (%p81_p4), %v206_v4  ;;  %209 = vst [vmem:[%s1994_s5 + $0x28] sm:$0xff] (%p81_p4), %v208_v5  ;;  %v210_v6 = vld [vmem:[%s1989_s4 + $0x60] sm:$0xff] (%p81_p4)  ;;  %v212_v7 = vld [vmem:[%s1989_s4 + $0x68] sm:$0xff] (%p81_p4) }
  0x1c   : > { %v214_v8 = vld [vmem:[%s1989_s4 + $0x80] sm:$0xff]  ;;  %211 = vst [vmem:[%s1994_s5 + $0x30] sm:$0xff] %v210_v6  ;;  %213 = vst [vmem:[%s1994_s5 + $0x38] sm:$0xff] %v212_v7  ;;  %v216_v9 = vld [vmem:[%s1989_s4 + $0x88] sm:$0xff] }
  0x1d   : > { %215 = vst [vmem:[%s1994_s5 + $0x40] sm:$0xff] %v214_v8  ;;  %v218_v10 = vld [vmem:[%s1989_s4 + $0xa0] sm:$0xff]  ;;  %v220_v11 = vld [vmem:[%s1989_s4 + $0xa8] sm:$0xff]  ;;  %217 = vst [vmem:[%s1994_s5 + $0x48] sm:$0xff] %v216_v9 }
  0x1e   : > { %219 = vst [vmem:[%s1994_s5 + $0x50] sm:$0xff] %v218_v10  ;;  %221 = vst [vmem:[%s1994_s5 + $0x58] sm:$0xff] %v220_v11  ;;  %v222_v12 = vld [vmem:[%s1989_s4 + $0xc0] sm:$0xff]  ;;  %v224_v13 = vld [vmem:[%s1989_s4 + $0xc8] sm:$0xff] }
  0x1f   : > { %v226_v14 = vld [vmem:[%s1989_s4 + $0xe0] sm:$0xff]  ;;  %223 = vst [vmem:[%s1994_s5 + $0x60] sm:$0xff] %v222_v12  ;;  %225 = vst [vmem:[%s1994_s5 + $0x68] sm:$0xff] %v224_v13  ;;  %v228_v15 = vld [vmem:[%s1989_s4 + $0xe8] sm:$0xff] }
  0x20   : > { %227 = vst [vmem:[%s1994_s5 + $0x70] sm:$0xff] %v226_v14  ;;  %v230_v16 = vld [vmem:[%s1989_s4 + $0x100] sm:$0xff]  ;;  %v232_v17 = vld [vmem:[%s1989_s4 + $0x108] sm:$0xff]  ;;  %229 = vst [vmem:[%s1994_s5 + $0x78] sm:$0xff] %v228_v15 }
  0x21   : > { %231 = vst [vmem:[%s1994_s5 + $0x80] sm:$0xff] %v230_v16  ;;  %233 = vst [vmem:[%s1994_s5 + $0x88] sm:$0xff] %v232_v17  ;;  %v234_v18 = vld [vmem:[%s1989_s4 + $0x120] sm:$0xff]  ;;  %v236_v19 = vld [vmem:[%s1989_s4 + $0x128] sm:$0xff] }
  0x22   : > { %v238_v20 = vld [vmem:[%s1989_s4 + $0x140] sm:$0xff]  ;;  %235 = vst [vmem:[%s1994_s5 + $0x90] sm:$0xff] %v234_v18  ;;  %237 = vst [vmem:[%s1994_s5 + $0x98] sm:$0xff] %v236_v19  ;;  %v240_v21 = vld [vmem:[%s1989_s4 + $0x148] sm:$0xff] }
  0x23   : > { %239 = vst [vmem:[%s1994_s5 + $0xa0] sm:$0xff] %v238_v20  ;;  %v242_v22 = vld [vmem:[%s1989_s4 + $0x160] sm:$0xff]  ;;  %v244_v23 = vld [vmem:[%s1989_s4 + $0x168] sm:$0xff]  ;;  %241 = vst [vmem:[%s1994_s5 + $0xa8] sm:$0xff] %v240_v21 }
  0x24   : > { %243 = vst [vmem:[%s1994_s5 + $0xb0] sm:$0xff] %v242_v22  ;;  %245 = vst [vmem:[%s1994_s5 + $0xb8] sm:$0xff] %v244_v23  ;;  %v246_v24 = vld [vmem:[%s1989_s4 + $0x180] sm:$0xff]  ;;  %v248_v25 = vld [vmem:[%s1989_s4 + $0x188] sm:$0xff] }
  0x25   : > { %v250_v26 = vld [vmem:[%s1989_s4 + $0x1a0] sm:$0xff]  ;;  %247 = vst [vmem:[%s1994_s5 + $0xc0] sm:$0xff] %v246_v24  ;;  %249 = vst [vmem:[%s1994_s5 + $0xc8] sm:$0xff] %v248_v25  ;;  %v252_v27 = vld [vmem:[%s1989_s4 + $0x1a8] sm:$0xff] }
  0x26   : > { %251 = vst [vmem:[%s1994_s5 + $0xd0] sm:$0xff] %v250_v26  ;;  %v254_v28 = vld [vmem:[%s1989_s4 + $0x1c0] sm:$0xff]  ;;  %v256_v29 = vld [vmem:[%s1989_s4 + $0x1c8] sm:$0xff]  ;;  %253 = vst [vmem:[%s1994_s5 + $0xd8] sm:$0xff] %v252_v27 }
  0x27   : > { %255 = vst [vmem:[%s1994_s5 + $0xe0] sm:$0xff] %v254_v28  ;;  %257 = vst [vmem:[%s1994_s5 + $0xe8] sm:$0xff] %v256_v29  ;;  %v258_v30 = vld [vmem:[%s1989_s4 + $0x1e0] sm:$0xff]  ;;  %v260_v31 = vld [vmem:[%s1989_s4 + $0x1e8] sm:$0xff] }
  0x28   : > { %v262_v32 = vld [vmem:[%s1989_s4 + $0x200] sm:$0xff]  ;;  %259 = vst [vmem:[%s1994_s5 + $0xf0] sm:$0xff] %v258_v30  ;;  %261 = vst [vmem:[%s1994_s5 + $0xf8] sm:$0xff] %v260_v31  ;;  %v264_v33 = vld [vmem:[%s1989_s4 + $0x208] sm:$0xff] }
  0x29   : > { %263 = vst [vmem:[%s1994_s5 + $0x100] sm:$0xff] %v262_v32  ;;  %v266_v34 = vld [vmem:[%s1989_s4 + $0x220] sm:$0xff]  ;;  %v268_v35 = vld [vmem:[%s1989_s4 + $0x228] sm:$0xff]  ;;  %265 = vst [vmem:[%s1994_s5 + $0x108] sm:$0xff] %v264_v33 }
  0x2a   : > { %267 = vst [vmem:[%s1994_s5 + $0x110] sm:$0xff] %v266_v34  ;;  %269 = vst [vmem:[%s1994_s5 + $0x118] sm:$0xff] %v268_v35  ;;  %v270_v36 = vld [vmem:[%s1989_s4 + $0x240] sm:$0xff]  ;;  %v272_v37 = vld [vmem:[%s1989_s4 + $0x248] sm:$0xff] }
  0x2b   : > { %v274_v38 = vld [vmem:[%s1989_s4 + $0x260] sm:$0xff]  ;;  %271 = vst [vmem:[%s1994_s5 + $0x120] sm:$0xff] %v270_v36  ;;  %273 = vst [vmem:[%s1994_s5 + $0x128] sm:$0xff] %v272_v37  ;;  %v276_v39 = vld [vmem:[%s1989_s4 + $0x268] sm:$0xff] }
  0x2c   : > { %275 = vst [vmem:[%s1994_s5 + $0x130] sm:$0xff] %v274_v38  ;;  %v278_v40 = vld [vmem:[%s1989_s4 + $0x280] sm:$0xff]  ;;  %v280_v41 = vld [vmem:[%s1989_s4 + $0x288] sm:$0xff]  ;;  %277 = vst [vmem:[%s1994_s5 + $0x138] sm:$0xff] %v276_v39 }
  0x2d   : > { %279 = vst [vmem:[%s1994_s5 + $0x140] sm:$0xff] %v278_v40  ;;  %281 = vst [vmem:[%s1994_s5 + $0x148] sm:$0xff] %v280_v41  ;;  %v282_v42 = vld [vmem:[%s1989_s4 + $0x2a0] sm:$0xff]  ;;  %v284_v43 = vld [vmem:[%s1989_s4 + $0x2a8] sm:$0xff] }
  0x2e   : > { %v286_v44 = vld [vmem:[%s1989_s4 + $0x2c0] sm:$0xff]  ;;  %283 = vst [vmem:[%s1994_s5 + $0x150] sm:$0xff] %v282_v42  ;;  %285 = vst [vmem:[%s1994_s5 + $0x158] sm:$0xff] %v284_v43  ;;  %v288_v45 = vld [vmem:[%s1989_s4 + $0x2c8] sm:$0xff] }
  0x2f   : > { %287 = vst [vmem:[%s1994_s5 + $0x160] sm:$0xff] %v286_v44  ;;  %v290_v46 = vld [vmem:[%s1989_s4 + $0x2e0] sm:$0xff]  ;;  %v292_v47 = vld [vmem:[%s1989_s4 + $0x2e8] sm:$0xff]  ;;  %289 = vst [vmem:[%s1994_s5 + $0x168] sm:$0xff] %v288_v45 }
  0x30   : > { %291 = vst [vmem:[%s1994_s5 + $0x170] sm:$0xff] %v290_v46  ;;  %293 = vst [vmem:[%s1994_s5 + $0x178] sm:$0xff] %v292_v47  ;;  %v294_v48 = vld [vmem:[%s1989_s4 + $0x300] sm:$0xff]  ;;  %v296_v49 = vld [vmem:[%s1989_s4 + $0x308] sm:$0xff] }
  0x31   : > { %v298_v50 = vld [vmem:[%s1989_s4 + $0x320] sm:$0xff]  ;;  %295 = vst [vmem:[%s1994_s5 + $0x180] sm:$0xff] %v294_v48  ;;  %297 = vst [vmem:[%s1994_s5 + $0x188] sm:$0xff] %v296_v49  ;;  %v300_v51 = vld [vmem:[%s1989_s4 + $0x328] sm:$0xff] }
  0x32   : > { %299 = vst [vmem:[%s1994_s5 + $0x190] sm:$0xff] %v298_v50  ;;  %v302_v52 = vld [vmem:[%s1989_s4 + $0x340] sm:$0xff]  ;;  %v304_v53 = vld [vmem:[%s1989_s4 + $0x348] sm:$0xff]  ;;  %301 = vst [vmem:[%s1994_s5 + $0x198] sm:$0xff] %v300_v51 }
  0x33   : > { %303 = vst [vmem:[%s1994_s5 + $0x1a0] sm:$0xff] %v302_v52  ;;  %305 = vst [vmem:[%s1994_s5 + $0x1a8] sm:$0xff] %v304_v53  ;;  %v306_v54 = vld [vmem:[%s1989_s4 + $0x360] sm:$0xff]  ;;  %v308_v55 = vld [vmem:[%s1989_s4 + $0x368] sm:$0xff] }
  0x34   : > { %v310_v56 = vld [vmem:[%s1989_s4 + $0x380] sm:$0xff]  ;;  %307 = vst [vmem:[%s1994_s5 + $0x1b0] sm:$0xff] %v306_v54  ;;  %309 = vst [vmem:[%s1994_s5 + $0x1b8] sm:$0xff] %v308_v55  ;;  %v312_v57 = vld [vmem:[%s1989_s4 + $0x388] sm:$0xff] }
  0x35   : > { %311 = vst [vmem:[%s1994_s5 + $0x1c0] sm:$0xff] %v310_v56  ;;  %v314_v58 = vld [vmem:[%s1989_s4 + $0x3a0] sm:$0xff]  ;;  %v316_v59 = vld [vmem:[%s1989_s4 + $0x3a8] sm:$0xff]  ;;  %313 = vst [vmem:[%s1994_s5 + $0x1c8] sm:$0xff] %v312_v57 }
  0x36   : > { %315 = vst [vmem:[%s1994_s5 + $0x1d0] sm:$0xff] %v314_v58  ;;  %317 = vst [vmem:[%s1994_s5 + $0x1d8] sm:$0xff] %v316_v59  ;;  %v318_v60 = vld [vmem:[%s1989_s4 + $0x3c0] sm:$0xff]  ;;  %v320_v61 = vld [vmem:[%s1989_s4 + $0x3c8] sm:$0xff] }
  0x37   : > { %v322_v62 = vld [vmem:[%s1989_s4 + $0x3e0] sm:$0xff]  ;;  %319 = vst [vmem:[%s1994_s5 + $0x1e0] sm:$0xff] %v318_v60  ;;  %321 = vst [vmem:[%s1994_s5 + $0x1e8] sm:$0xff] %v320_v61  ;;  %v324_v63 = vld [vmem:[%s1989_s4 + $0x3e8] sm:$0xff] }
  0x38   : > { %323 = vst [vmem:[%s1994_s5 + $0x1f0] sm:$0xff] %v322_v62  ;;  %v326_v0 = vld [vmem:[%s1989_s4 + $0x400] sm:$0xff]  ;;  %v328_v1 = vld [vmem:[%s1989_s4 + $0x408] sm:$0xff]  ;;  %325 = vst [vmem:[%s1994_s5 + $0x1f8] sm:$0xff] %v324_v63 }
  0x39   : > { %327 = vst [vmem:[%s1994_s5 + $0x200] sm:$0xff] %v326_v0  ;;  %329 = vst [vmem:[%s1994_s5 + $0x208] sm:$0xff] %v328_v1  ;;  %v330_v2 = vld [vmem:[%s1989_s4 + $0x420] sm:$0xff]  ;;  %v332_v3 = vld [vmem:[%s1989_s4 + $0x428] sm:$0xff] }
  0x3a   : > { %v334_v4 = vld [vmem:[%s1989_s4 + $0x440] sm:$0xff]  ;;  %331 = vst [vmem:[%s1994_s5 + $0x210] sm:$0xff] %v330_v2  ;;  %333 = vst [vmem:[%s1994_s5 + $0x218] sm:$0xff] %v332_v3  ;;  %v336_v5 = vld [vmem:[%s1989_s4 + $0x448] sm:$0xff] }
  0x3b   : > { %335 = vst [vmem:[%s1994_s5 + $0x220] sm:$0xff] %v334_v4  ;;  %v338_v6 = vld [vmem:[%s1989_s4 + $0x460] sm:$0xff]  ;;  %v340_v7 = vld [vmem:[%s1989_s4 + $0x468] sm:$0xff]  ;;  %337 = vst [vmem:[%s1994_s5 + $0x228] sm:$0xff] %v336_v5 }
  0x3c   : > { %339 = vst [vmem:[%s1994_s5 + $0x230] sm:$0xff] %v338_v6  ;;  %341 = vst [vmem:[%s1994_s5 + $0x238] sm:$0xff] %v340_v7  ;;  %v342_v8 = vld [vmem:[%s1989_s4 + $0x480] sm:$0xff]  ;;  %v344_v9 = vld [vmem:[%s1989_s4 + $0x488] sm:$0xff] }
  0x3d   : > { %v346_v10 = vld [vmem:[%s1989_s4 + $0x4a0] sm:$0xff]  ;;  %343 = vst [vmem:[%s1994_s5 + $0x240] sm:$0xff] %v342_v8  ;;  %345 = vst [vmem:[%s1994_s5 + $0x248] sm:$0xff] %v344_v9  ;;  %v348_v11 = vld [vmem:[%s1989_s4 + $0x4a8] sm:$0xff] }
  0x3e   : > { %347 = vst [vmem:[%s1994_s5 + $0x250] sm:$0xff] %v346_v10  ;;  %v350_v12 = vld [vmem:[%s1989_s4 + $0x4c0] sm:$0xff]  ;;  %v352_v13 = vld [vmem:[%s1989_s4 + $0x4c8] sm:$0xff]  ;;  %349 = vst [vmem:[%s1994_s5 + $0x258] sm:$0xff] %v348_v11 }
  0x3f   : > { %351 = vst [vmem:[%s1994_s5 + $0x260] sm:$0xff] %v350_v12  ;;  %353 = vst [vmem:[%s1994_s5 + $0x268] sm:$0xff] %v352_v13  ;;  %v354_v14 = vld [vmem:[%s1989_s4 + $0x4e0] sm:$0xff]  ;;  %v356_v15 = vld [vmem:[%s1989_s4 + $0x4e8] sm:$0xff] }
  0x40   : > { %v358_v16 = vld [vmem:[%s1989_s4 + $0x500] sm:$0xff]  ;;  %355 = vst [vmem:[%s1994_s5 + $0x270] sm:$0xff] %v354_v14  ;;  %357 = vst [vmem:[%s1994_s5 + $0x278] sm:$0xff] %v356_v15  ;;  %v360_v17 = vld [vmem:[%s1989_s4 + $0x508] sm:$0xff] }
  0x41   : > { %359 = vst [vmem:[%s1994_s5 + $0x280] sm:$0xff] %v358_v16  ;;  %v362_v18 = vld [vmem:[%s1989_s4 + $0x520] sm:$0xff]  ;;  %v364_v19 = vld [vmem:[%s1989_s4 + $0x528] sm:$0xff]  ;;  %361 = vst [vmem:[%s1994_s5 + $0x288] sm:$0xff] %v360_v17 }
  0x42   : > { %363 = vst [vmem:[%s1994_s5 + $0x290] sm:$0xff] %v362_v18  ;;  %365 = vst [vmem:[%s1994_s5 + $0x298] sm:$0xff] %v364_v19  ;;  %v366_v20 = vld [vmem:[%s1989_s4 + $0x540] sm:$0xff]  ;;  %v368_v21 = vld [vmem:[%s1989_s4 + $0x548] sm:$0xff] }
  0x43   : > { %v370_v22 = vld [vmem:[%s1989_s4 + $0x560] sm:$0xff]  ;;  %367 = vst [vmem:[%s1994_s5 + $0x2a0] sm:$0xff] %v366_v20  ;;  %369 = vst [vmem:[%s1994_s5 + $0x2a8] sm:$0xff] %v368_v21  ;;  %v372_v23 = vld [vmem:[%s1989_s4 + $0x568] sm:$0xff] }
  0x44   : > { %371 = vst [vmem:[%s1994_s5 + $0x2b0] sm:$0xff] %v370_v22  ;;  %v374_v24 = vld [vmem:[%s1989_s4 + $0x580] sm:$0xff]  ;;  %v376_v25 = vld [vmem:[%s1989_s4 + $0x588] sm:$0xff]  ;;  %373 = vst [vmem:[%s1994_s5 + $0x2b8] sm:$0xff] %v372_v23 }
  0x45   : > { %375 = vst [vmem:[%s1994_s5 + $0x2c0] sm:$0xff] %v374_v24  ;;  %377 = vst [vmem:[%s1994_s5 + $0x2c8] sm:$0xff] %v376_v25  ;;  %v378_v26 = vld [vmem:[%s1989_s4 + $0x5a0] sm:$0xff]  ;;  %v380_v27 = vld [vmem:[%s1989_s4 + $0x5a8] sm:$0xff] }
  0x46   : > { %v382_v28 = vld [vmem:[%s1989_s4 + $0x5c0] sm:$0xff]  ;;  %379 = vst [vmem:[%s1994_s5 + $0x2d0] sm:$0xff] %v378_v26  ;;  %381 = vst [vmem:[%s1994_s5 + $0x2d8] sm:$0xff] %v380_v27  ;;  %v384_v29 = vld [vmem:[%s1989_s4 + $0x5c8] sm:$0xff] }
  0x47   : > { %383 = vst [vmem:[%s1994_s5 + $0x2e0] sm:$0xff] %v382_v28  ;;  %v386_v30 = vld [vmem:[%s1989_s4 + $0x5e0] sm:$0xff]  ;;  %v388_v31 = vld [vmem:[%s1989_s4 + $0x5e8] sm:$0xff]  ;;  %385 = vst [vmem:[%s1994_s5 + $0x2e8] sm:$0xff] %v384_v29 }
  0x48   : > { %387 = vst [vmem:[%s1994_s5 + $0x2f0] sm:$0xff] %v386_v30  ;;  %389 = vst [vmem:[%s1994_s5 + $0x2f8] sm:$0xff] %v388_v31  ;;  %v390_v32 = vld [vmem:[%s1989_s4 + $0x600] sm:$0xff]  ;;  %v392_v33 = vld [vmem:[%s1989_s4 + $0x608] sm:$0xff] }
  0x49   : > { %v394_v34 = vld [vmem:[%s1989_s4 + $0x620] sm:$0xff]  ;;  %391 = vst [vmem:[%s1994_s5 + $0x300] sm:$0xff] %v390_v32  ;;  %393 = vst [vmem:[%s1994_s5 + $0x308] sm:$0xff] %v392_v33  ;;  %v396_v35 = vld [vmem:[%s1989_s4 + $0x628] sm:$0xff] }
  0x4a   : > { %395 = vst [vmem:[%s1994_s5 + $0x310] sm:$0xff] %v394_v34  ;;  %v398_v36 = vld [vmem:[%s1989_s4 + $0x640] sm:$0xff]  ;;  %v400_v37 = vld [vmem:[%s1989_s4 + $0x648] sm:$0xff]  ;;  %397 = vst [vmem:[%s1994_s5 + $0x318] sm:$0xff] %v396_v35 }
  0x4b   : > { %399 = vst [vmem:[%s1994_s5 + $0x320] sm:$0xff] %v398_v36  ;;  %401 = vst [vmem:[%s1994_s5 + $0x328] sm:$0xff] %v400_v37  ;;  %v402_v38 = vld [vmem:[%s1989_s4 + $0x660] sm:$0xff]  ;;  %v404_v39 = vld [vmem:[%s1989_s4 + $0x668] sm:$0xff] }
  0x4c   : > { %v406_v40 = vld [vmem:[%s1989_s4 + $0x680] sm:$0xff]  ;;  %403 = vst [vmem:[%s1994_s5 + $0x330] sm:$0xff] %v402_v38  ;;  %405 = vst [vmem:[%s1994_s5 + $0x338] sm:$0xff] %v404_v39  ;;  %v408_v41 = vld [vmem:[%s1989_s4 + $0x688] sm:$0xff] }
  0x4d   : > { %407 = vst [vmem:[%s1994_s5 + $0x340] sm:$0xff] %v406_v40  ;;  %v410_v42 = vld [vmem:[%s1989_s4 + $0x6a0] sm:$0xff]  ;;  %v412_v43 = vld [vmem:[%s1989_s4 + $0x6a8] sm:$0xff]  ;;  %409 = vst [vmem:[%s1994_s5 + $0x348] sm:$0xff] %v408_v41 }
  0x4e   : > { %411 = vst [vmem:[%s1994_s5 + $0x350] sm:$0xff] %v410_v42  ;;  %413 = vst [vmem:[%s1994_s5 + $0x358] sm:$0xff] %v412_v43  ;;  %v414_v44 = vld [vmem:[%s1989_s4 + $0x6c0] sm:$0xff]  ;;  %v416_v45 = vld [vmem:[%s1989_s4 + $0x6c8] sm:$0xff] }
  0x4f   : > { %v418_v46 = vld [vmem:[%s1989_s4 + $0x6e0] sm:$0xff]  ;;  %415 = vst [vmem:[%s1994_s5 + $0x360] sm:$0xff] %v414_v44  ;;  %417 = vst [vmem:[%s1994_s5 + $0x368] sm:$0xff] %v416_v45  ;;  %v420_v47 = vld [vmem:[%s1989_s4 + $0x6e8] sm:$0xff] }
  0x50   : > { %419 = vst [vmem:[%s1994_s5 + $0x370] sm:$0xff] %v418_v46  ;;  %v422_v48 = vld [vmem:[%s1989_s4 + $0x700] sm:$0xff]  ;;  %v424_v49 = vld [vmem:[%s1989_s4 + $0x708] sm:$0xff]  ;;  %421 = vst [vmem:[%s1994_s5 + $0x378] sm:$0xff] %v420_v47 }
  0x51   : > { %423 = vst [vmem:[%s1994_s5 + $0x380] sm:$0xff] %v422_v48  ;;  %425 = vst [vmem:[%s1994_s5 + $0x388] sm:$0xff] %v424_v49  ;;  %v426_v50 = vld [vmem:[%s1989_s4 + $0x720] sm:$0xff]  ;;  %v428_v51 = vld [vmem:[%s1989_s4 + $0x728] sm:$0xff] }
  0x52   : > { %v430_v52 = vld [vmem:[%s1989_s4 + $0x740] sm:$0xff]  ;;  %427 = vst [vmem:[%s1994_s5 + $0x390] sm:$0xff] %v426_v50  ;;  %429 = vst [vmem:[%s1994_s5 + $0x398] sm:$0xff] %v428_v51  ;;  %v432_v53 = vld [vmem:[%s1989_s4 + $0x748] sm:$0xff] }
  0x53   : > { %431 = vst [vmem:[%s1994_s5 + $0x3a0] sm:$0xff] %v430_v52  ;;  %v434_v54 = vld [vmem:[%s1989_s4 + $0x760] sm:$0xff]  ;;  %v436_v55 = vld [vmem:[%s1989_s4 + $0x768] sm:$0xff]  ;;  %433 = vst [vmem:[%s1994_s5 + $0x3a8] sm:$0xff] %v432_v53 }
  0x54   : > { %435 = vst [vmem:[%s1994_s5 + $0x3b0] sm:$0xff] %v434_v54  ;;  %437 = vst [vmem:[%s1994_s5 + $0x3b8] sm:$0xff] %v436_v55  ;;  %v438_v56 = vld [vmem:[%s1989_s4 + $0x780] sm:$0xff]  ;;  %v440_v57 = vld [vmem:[%s1989_s4 + $0x788] sm:$0xff] }
  0x55   : > { %v442_v58 = vld [vmem:[%s1989_s4 + $0x7a0] sm:$0xff]  ;;  %439 = vst [vmem:[%s1994_s5 + $0x3c0] sm:$0xff] %v438_v56  ;;  %441 = vst [vmem:[%s1994_s5 + $0x3c8] sm:$0xff] %v440_v57  ;;  %v444_v59 = vld [vmem:[%s1989_s4 + $0x7a8] sm:$0xff] }
  0x56   : > { %443 = vst [vmem:[%s1994_s5 + $0x3d0] sm:$0xff] %v442_v58  ;;  %v446_v60 = vld [vmem:[%s1989_s4 + $0x7c0] sm:$0xff]  ;;  %v448_v61 = vld [vmem:[%s1989_s4 + $0x7c8] sm:$0xff]  ;;  %445 = vst [vmem:[%s1994_s5 + $0x3d8] sm:$0xff] %v444_v59 }
  0x57   : > { %447 = vst [vmem:[%s1994_s5 + $0x3e0] sm:$0xff] %v446_v60  ;;  %449 = vst [vmem:[%s1994_s5 + $0x3e8] sm:$0xff] %v448_v61  ;;  %v450_v62 = vld [vmem:[%s1989_s4 + $0x7e0] sm:$0xff]  ;;  %v452_v63 = vld [vmem:[%s1989_s4 + $0x7e8] sm:$0xff] }
  0x58   : > { %v454_v0 = vld [vmem:[%s1989_s4 + $0x800] sm:$0xff]  ;;  %451 = vst [vmem:[%s1994_s5 + $0x3f0] sm:$0xff] %v450_v62  ;;  %453 = vst [vmem:[%s1994_s5 + $0x3f8] sm:$0xff] %v452_v63  ;;  %v456_v1 = vld [vmem:[%s1989_s4 + $0x808] sm:$0xff] }
  0x59   : > { %455 = vst [vmem:[%s1994_s5 + $0x400] sm:$0xff] %v454_v0  ;;  %v458_v2 = vld [vmem:[%s1989_s4 + $0x820] sm:$0xff]  ;;  %v460_v3 = vld [vmem:[%s1989_s4 + $0x828] sm:$0xff]  ;;  %457 = vst [vmem:[%s1994_s5 + $0x408] sm:$0xff] %v456_v1 }
  0x5a   : > { %459 = vst [vmem:[%s1994_s5 + $0x410] sm:$0xff] %v458_v2  ;;  %461 = vst [vmem:[%s1994_s5 + $0x418] sm:$0xff] %v460_v3  ;;  %v462_v4 = vld [vmem:[%s1989_s4 + $0x840] sm:$0xff]  ;;  %v464_v5 = vld [vmem:[%s1989_s4 + $0x848] sm:$0xff] }
  0x5b   : > { %v466_v6 = vld [vmem:[%s1989_s4 + $0x860] sm:$0xff]  ;;  %463 = vst [vmem:[%s1994_s5 + $0x420] sm:$0xff] %v462_v4  ;;  %465 = vst [vmem:[%s1994_s5 + $0x428] sm:$0xff] %v464_v5  ;;  %v468_v7 = vld [vmem:[%s1989_s4 + $0x868] sm:$0xff] }
  0x5c   : > { %467 = vst [vmem:[%s1994_s5 + $0x430] sm:$0xff] %v466_v6  ;;  %v470_v8 = vld [vmem:[%s1989_s4 + $0x880] sm:$0xff]  ;;  %v472_v9 = vld [vmem:[%s1989_s4 + $0x888] sm:$0xff]  ;;  %469 = vst [vmem:[%s1994_s5 + $0x438] sm:$0xff] %v468_v7 }
  0x5d   : > { %471 = vst [vmem:[%s1994_s5 + $0x440] sm:$0xff] %v470_v8  ;;  %473 = vst [vmem:[%s1994_s5 + $0x448] sm:$0xff] %v472_v9  ;;  %v474_v10 = vld [vmem:[%s1989_s4 + $0x8a0] sm:$0xff]  ;;  %v476_v11 = vld [vmem:[%s1989_s4 + $0x8a8] sm:$0xff] }
  0x5e   : > { %v478_v12 = vld [vmem:[%s1989_s4 + $0x8c0] sm:$0xff]  ;;  %475 = vst [vmem:[%s1994_s5 + $0x450] sm:$0xff] %v474_v10  ;;  %477 = vst [vmem:[%s1994_s5 + $0x458] sm:$0xff] %v476_v11  ;;  %v480_v13 = vld [vmem:[%s1989_s4 + $0x8c8] sm:$0xff] }
  0x5f   : > { %479 = vst [vmem:[%s1994_s5 + $0x460] sm:$0xff] %v478_v12  ;;  %v482_v14 = vld [vmem:[%s1989_s4 + $0x8e0] sm:$0xff]  ;;  %v484_v15 = vld [vmem:[%s1989_s4 + $0x8e8] sm:$0xff]  ;;  %481 = vst [vmem:[%s1994_s5 + $0x468] sm:$0xff] %v480_v13 }
  0x60   : > { %483 = vst [vmem:[%s1994_s5 + $0x470] sm:$0xff] %v482_v14  ;;  %485 = vst [vmem:[%s1994_s5 + $0x478] sm:$0xff] %v484_v15  ;;  %v486_v16 = vld [vmem:[%s1989_s4 + $0x900] sm:$0xff]  ;;  %v488_v17 = vld [vmem:[%s1989_s4 + $0x908] sm:$0xff] }
  0x61   : > { %v490_v18 = vld [vmem:[%s1989_s4 + $0x920] sm:$0xff]  ;;  %487 = vst [vmem:[%s1994_s5 + $0x480] sm:$0xff] %v486_v16  ;;  %489 = vst [vmem:[%s1994_s5 + $0x488] sm:$0xff] %v488_v17  ;;  %v492_v19 = vld [vmem:[%s1989_s4 + $0x928] sm:$0xff] }
  0x62   : > { %491 = vst [vmem:[%s1994_s5 + $0x490] sm:$0xff] %v490_v18  ;;  %v494_v20 = vld [vmem:[%s1989_s4 + $0x940] sm:$0xff]  ;;  %v496_v21 = vld [vmem:[%s1989_s4 + $0x948] sm:$0xff]  ;;  %493 = vst [vmem:[%s1994_s5 + $0x498] sm:$0xff] %v492_v19 }
  0x63   : > { %495 = vst [vmem:[%s1994_s5 + $0x4a0] sm:$0xff] %v494_v20  ;;  %497 = vst [vmem:[%s1994_s5 + $0x4a8] sm:$0xff] %v496_v21  ;;  %v498_v22 = vld [vmem:[%s1989_s4 + $0x960] sm:$0xff]  ;;  %v500_v23 = vld [vmem:[%s1989_s4 + $0x968] sm:$0xff] }
  0x64   : > { %v502_v24 = vld [vmem:[%s1989_s4 + $0x980] sm:$0xff]  ;;  %499 = vst [vmem:[%s1994_s5 + $0x4b0] sm:$0xff] %v498_v22  ;;  %501 = vst [vmem:[%s1994_s5 + $0x4b8] sm:$0xff] %v500_v23  ;;  %v504_v25 = vld [vmem:[%s1989_s4 + $0x988] sm:$0xff] }
  0x65   : > { %503 = vst [vmem:[%s1994_s5 + $0x4c0] sm:$0xff] %v502_v24  ;;  %v506_v26 = vld [vmem:[%s1989_s4 + $0x9a0] sm:$0xff]  ;;  %v508_v27 = vld [vmem:[%s1989_s4 + $0x9a8] sm:$0xff]  ;;  %505 = vst [vmem:[%s1994_s5 + $0x4c8] sm:$0xff] %v504_v25 }
  0x66   : > { %507 = vst [vmem:[%s1994_s5 + $0x4d0] sm:$0xff] %v506_v26  ;;  %509 = vst [vmem:[%s1994_s5 + $0x4d8] sm:$0xff] %v508_v27  ;;  %v510_v28 = vld [vmem:[%s1989_s4 + $0x9c0] sm:$0xff]  ;;  %v512_v29 = vld [vmem:[%s1989_s4 + $0x9c8] sm:$0xff] }
  0x67   : > { %v514_v30 = vld [vmem:[%s1989_s4 + $0x9e0] sm:$0xff]  ;;  %511 = vst [vmem:[%s1994_s5 + $0x4e0] sm:$0xff] %v510_v28  ;;  %513 = vst [vmem:[%s1994_s5 + $0x4e8] sm:$0xff] %v512_v29  ;;  %v516_v31 = vld [vmem:[%s1989_s4 + $0x9e8] sm:$0xff] }
  0x68   : > { %515 = vst [vmem:[%s1994_s5 + $0x4f0] sm:$0xff] %v514_v30  ;;  %v518_v32 = vld [vmem:[%s1989_s4 + $0xa00] sm:$0xff]  ;;  %v520_v33 = vld [vmem:[%s1989_s4 + $0xa08] sm:$0xff]  ;;  %517 = vst [vmem:[%s1994_s5 + $0x4f8] sm:$0xff] %v516_v31 }
  0x69   : > { %519 = vst [vmem:[%s1994_s5 + $0x500] sm:$0xff] %v518_v32  ;;  %521 = vst [vmem:[%s1994_s5 + $0x508] sm:$0xff] %v520_v33  ;;  %v522_v34 = vld [vmem:[%s1989_s4 + $0xa20] sm:$0xff]  ;;  %v524_v35 = vld [vmem:[%s1989_s4 + $0xa28] sm:$0xff] }
  0x6a   : > { %v526_v36 = vld [vmem:[%s1989_s4 + $0xa40] sm:$0xff]  ;;  %523 = vst [vmem:[%s1994_s5 + $0x510] sm:$0xff] %v522_v34  ;;  %525 = vst [vmem:[%s1994_s5 + $0x518] sm:$0xff] %v524_v35  ;;  %v528_v37 = vld [vmem:[%s1989_s4 + $0xa48] sm:$0xff] }
  0x6b   : > { %527 = vst [vmem:[%s1994_s5 + $0x520] sm:$0xff] %v526_v36  ;;  %v530_v38 = vld [vmem:[%s1989_s4 + $0xa60] sm:$0xff]  ;;  %v532_v39 = vld [vmem:[%s1989_s4 + $0xa68] sm:$0xff]  ;;  %529 = vst [vmem:[%s1994_s5 + $0x528] sm:$0xff] %v528_v37 }
  0x6c   : > { %531 = vst [vmem:[%s1994_s5 + $0x530] sm:$0xff] %v530_v38  ;;  %533 = vst [vmem:[%s1994_s5 + $0x538] sm:$0xff] %v532_v39  ;;  %v534_v40 = vld [vmem:[%s1989_s4 + $0xa80] sm:$0xff]  ;;  %v536_v41 = vld [vmem:[%s1989_s4 + $0xa88] sm:$0xff] }
  0x6d   : > { %v538_v42 = vld [vmem:[%s1989_s4 + $0xaa0] sm:$0xff]  ;;  %535 = vst [vmem:[%s1994_s5 + $0x540] sm:$0xff] %v534_v40  ;;  %537 = vst [vmem:[%s1994_s5 + $0x548] sm:$0xff] %v536_v41  ;;  %v540_v43 = vld [vmem:[%s1989_s4 + $0xaa8] sm:$0xff] }
  0x6e   : > { %539 = vst [vmem:[%s1994_s5 + $0x550] sm:$0xff] %v538_v42  ;;  %v542_v44 = vld [vmem:[%s1989_s4 + $0xac0] sm:$0xff]  ;;  %v544_v45 = vld [vmem:[%s1989_s4 + $0xac8] sm:$0xff]  ;;  %541 = vst [vmem:[%s1994_s5 + $0x558] sm:$0xff] %v540_v43 }
  0x6f   : > { %543 = vst [vmem:[%s1994_s5 + $0x560] sm:$0xff] %v542_v44  ;;  %545 = vst [vmem:[%s1994_s5 + $0x568] sm:$0xff] %v544_v45  ;;  %v546_v46 = vld [vmem:[%s1989_s4 + $0xae0] sm:$0xff]  ;;  %v548_v47 = vld [vmem:[%s1989_s4 + $0xae8] sm:$0xff] }
  0x70   : > { %v550_v48 = vld [vmem:[%s1989_s4 + $0xb00] sm:$0xff]  ;;  %547 = vst [vmem:[%s1994_s5 + $0x570] sm:$0xff] %v546_v46  ;;  %549 = vst [vmem:[%s1994_s5 + $0x578] sm:$0xff] %v548_v47  ;;  %v552_v49 = vld [vmem:[%s1989_s4 + $0xb08] sm:$0xff] }
  0x71   : > { %551 = vst [vmem:[%s1994_s5 + $0x580] sm:$0xff] %v550_v48  ;;  %v554_v50 = vld [vmem:[%s1989_s4 + $0xb20] sm:$0xff]  ;;  %v556_v51 = vld [vmem:[%s1989_s4 + $0xb28] sm:$0xff]  ;;  %553 = vst [vmem:[%s1994_s5 + $0x588] sm:$0xff] %v552_v49 }
  0x72   : > { %555 = vst [vmem:[%s1994_s5 + $0x590] sm:$0xff] %v554_v50  ;;  %557 = vst [vmem:[%s1994_s5 + $0x598] sm:$0xff] %v556_v51  ;;  %v558_v52 = vld [vmem:[%s1989_s4 + $0xb40] sm:$0xff]  ;;  %v560_v53 = vld [vmem:[%s1989_s4 + $0xb48] sm:$0xff] }
  0x73   : > { %v562_v54 = vld [vmem:[%s1989_s4 + $0xb60] sm:$0xff]  ;;  %559 = vst [vmem:[%s1994_s5 + $0x5a0] sm:$0xff] %v558_v52  ;;  %561 = vst [vmem:[%s1994_s5 + $0x5a8] sm:$0xff] %v560_v53  ;;  %v564_v55 = vld [vmem:[%s1989_s4 + $0xb68] sm:$0xff] }
  0x74   : > { %563 = vst [vmem:[%s1994_s5 + $0x5b0] sm:$0xff] %v562_v54  ;;  %v566_v56 = vld [vmem:[%s1989_s4 + $0xb80] sm:$0xff]  ;;  %v568_v57 = vld [vmem:[%s1989_s4 + $0xb88] sm:$0xff]  ;;  %565 = vst [vmem:[%s1994_s5 + $0x5b8] sm:$0xff] %v564_v55 }
  0x75   : > { %567 = vst [vmem:[%s1994_s5 + $0x5c0] sm:$0xff] %v566_v56  ;;  %569 = vst [vmem:[%s1994_s5 + $0x5c8] sm:$0xff] %v568_v57  ;;  %v570_v58 = vld [vmem:[%s1989_s4 + $0xba0] sm:$0xff]  ;;  %v572_v59 = vld [vmem:[%s1989_s4 + $0xba8] sm:$0xff] }
  0x76   : > { %v574_v60 = vld [vmem:[%s1989_s4 + $0xbc0] sm:$0xff]  ;;  %571 = vst [vmem:[%s1994_s5 + $0x5d0] sm:$0xff] %v570_v58  ;;  %573 = vst [vmem:[%s1994_s5 + $0x5d8] sm:$0xff] %v572_v59  ;;  %v576_v61 = vld [vmem:[%s1989_s4 + $0xbc8] sm:$0xff] }
  0x77   : > { %575 = vst [vmem:[%s1994_s5 + $0x5e0] sm:$0xff] %v574_v60  ;;  %v578_v62 = vld [vmem:[%s1989_s4 + $0xbe0] sm:$0xff]  ;;  %v580_v63 = vld [vmem:[%s1989_s4 + $0xbe8] sm:$0xff]  ;;  %577 = vst [vmem:[%s1994_s5 + $0x5e8] sm:$0xff] %v576_v61 }
  0x78   : > { %579 = vst [vmem:[%s1994_s5 + $0x5f0] sm:$0xff] %v578_v62  ;;  %581 = vst [vmem:[%s1994_s5 + $0x5f8] sm:$0xff] %v580_v63  ;;  %v582_v0 = vld [vmem:[%s1989_s4 + $0xc00] sm:$0xff]  ;;  %v584_v1 = vld [vmem:[%s1989_s4 + $0xc08] sm:$0xff] }
  0x79   : > { %v586_v2 = vld [vmem:[%s1989_s4 + $0xc20] sm:$0xff]  ;;  %583 = vst [vmem:[%s1994_s5 + $0x600] sm:$0xff] %v582_v0  ;;  %585 = vst [vmem:[%s1994_s5 + $0x608] sm:$0xff] %v584_v1  ;;  %v588_v3 = vld [vmem:[%s1989_s4 + $0xc28] sm:$0xff] }
  0x7a   : > { %587 = vst [vmem:[%s1994_s5 + $0x610] sm:$0xff] %v586_v2  ;;  %v590_v4 = vld [vmem:[%s1989_s4 + $0xc40] sm:$0xff]  ;;  %v592_v5 = vld [vmem:[%s1989_s4 + $0xc48] sm:$0xff]  ;;  %589 = vst [vmem:[%s1994_s5 + $0x618] sm:$0xff] %v588_v3 }
  0x7b   : > { %591 = vst [vmem:[%s1994_s5 + $0x620] sm:$0xff] %v590_v4  ;;  %593 = vst [vmem:[%s1994_s5 + $0x628] sm:$0xff] %v592_v5  ;;  %v594_v6 = vld [vmem:[%s1989_s4 + $0xc60] sm:$0xff]  ;;  %v596_v7 = vld [vmem:[%s1989_s4 + $0xc68] sm:$0xff] }
  0x7c   : > { %v598_v8 = vld [vmem:[%s1989_s4 + $0xc80] sm:$0xff]  ;;  %595 = vst [vmem:[%s1994_s5 + $0x630] sm:$0xff] %v594_v6  ;;  %597 = vst [vmem:[%s1994_s5 + $0x638] sm:$0xff] %v596_v7  ;;  %v600_v9 = vld [vmem:[%s1989_s4 + $0xc88] sm:$0xff] }
  0x7d   : > { %599 = vst [vmem:[%s1994_s5 + $0x640] sm:$0xff] %v598_v8  ;;  %v602_v10 = vld [vmem:[%s1989_s4 + $0xca0] sm:$0xff]  ;;  %v604_v11 = vld [vmem:[%s1989_s4 + $0xca8] sm:$0xff]  ;;  %601 = vst [vmem:[%s1994_s5 + $0x648] sm:$0xff] %v600_v9 }
  0x7e   : > { %603 = vst [vmem:[%s1994_s5 + $0x650] sm:$0xff] %v602_v10  ;;  %605 = vst [vmem:[%s1994_s5 + $0x658] sm:$0xff] %v604_v11  ;;  %v606_v12 = vld [vmem:[%s1989_s4 + $0xcc0] sm:$0xff]  ;;  %v608_v13 = vld [vmem:[%s1989_s4 + $0xcc8] sm:$0xff] }
  0x7f   : > { %v610_v14 = vld [vmem:[%s1989_s4 + $0xce0] sm:$0xff]  ;;  %607 = vst [vmem:[%s1994_s5 + $0x660] sm:$0xff] %v606_v12  ;;  %609 = vst [vmem:[%s1994_s5 + $0x668] sm:$0xff] %v608_v13  ;;  %v612_v15 = vld [vmem:[%s1989_s4 + $0xce8] sm:$0xff] }
  0x80   : > { %611 = vst [vmem:[%s1994_s5 + $0x670] sm:$0xff] %v610_v14  ;;  %v614_v16 = vld [vmem:[%s1989_s4 + $0xd00] sm:$0xff]  ;;  %v616_v17 = vld [vmem:[%s1989_s4 + $0xd08] sm:$0xff]  ;;  %613 = vst [vmem:[%s1994_s5 + $0x678] sm:$0xff] %v612_v15 }
  0x81   : > { %615 = vst [vmem:[%s1994_s5 + $0x680] sm:$0xff] %v614_v16  ;;  %617 = vst [vmem:[%s1994_s5 + $0x688] sm:$0xff] %v616_v17  ;;  %v618_v18 = vld [vmem:[%s1989_s4 + $0xd20] sm:$0xff]  ;;  %v620_v19 = vld [vmem:[%s1989_s4 + $0xd28] sm:$0xff] }
  0x82   : > { %v622_v20 = vld [vmem:[%s1989_s4 + $0xd40] sm:$0xff]  ;;  %619 = vst [vmem:[%s1994_s5 + $0x690] sm:$0xff] %v618_v18  ;;  %621 = vst [vmem:[%s1994_s5 + $0x698] sm:$0xff] %v620_v19  ;;  %v624_v21 = vld [vmem:[%s1989_s4 + $0xd48] sm:$0xff] }
  0x83   : > { %623 = vst [vmem:[%s1994_s5 + $0x6a0] sm:$0xff] %v622_v20  ;;  %v626_v22 = vld [vmem:[%s1989_s4 + $0xd60] sm:$0xff]  ;;  %v628_v23 = vld [vmem:[%s1989_s4 + $0xd68] sm:$0xff]  ;;  %625 = vst [vmem:[%s1994_s5 + $0x6a8] sm:$0xff] %v624_v21 }
  0x84   : > { %627 = vst [vmem:[%s1994_s5 + $0x6b0] sm:$0xff] %v626_v22  ;;  %629 = vst [vmem:[%s1994_s5 + $0x6b8] sm:$0xff] %v628_v23  ;;  %v630_v24 = vld [vmem:[%s1989_s4 + $0xd80] sm:$0xff]  ;;  %v632_v25 = vld [vmem:[%s1989_s4 + $0xd88] sm:$0xff] }
  0x85   : > { %v634_v26 = vld [vmem:[%s1989_s4 + $0xda0] sm:$0xff]  ;;  %631 = vst [vmem:[%s1994_s5 + $0x6c0] sm:$0xff] %v630_v24  ;;  %633 = vst [vmem:[%s1994_s5 + $0x6c8] sm:$0xff] %v632_v25  ;;  %v636_v27 = vld [vmem:[%s1989_s4 + $0xda8] sm:$0xff] }
  0x86   : > { %635 = vst [vmem:[%s1994_s5 + $0x6d0] sm:$0xff] %v634_v26  ;;  %v638_v28 = vld [vmem:[%s1989_s4 + $0xdc0] sm:$0xff]  ;;  %v640_v29 = vld [vmem:[%s1989_s4 + $0xdc8] sm:$0xff]  ;;  %637 = vst [vmem:[%s1994_s5 + $0x6d8] sm:$0xff] %v636_v27 }
  0x87   : > { %639 = vst [vmem:[%s1994_s5 + $0x6e0] sm:$0xff] %v638_v28  ;;  %641 = vst [vmem:[%s1994_s5 + $0x6e8] sm:$0xff] %v640_v29  ;;  %v642_v30 = vld [vmem:[%s1989_s4 + $0xde0] sm:$0xff]  ;;  %v644_v31 = vld [vmem:[%s1989_s4 + $0xde8] sm:$0xff] }
  0x88   : > { %v646_v32 = vld [vmem:[%s1989_s4 + $0xe00] sm:$0xff]  ;;  %643 = vst [vmem:[%s1994_s5 + $0x6f0] sm:$0xff] %v642_v30  ;;  %645 = vst [vmem:[%s1994_s5 + $0x6f8] sm:$0xff] %v644_v31  ;;  %v648_v33 = vld [vmem:[%s1989_s4 + $0xe08] sm:$0xff] }
  0x89   : > { %647 = vst [vmem:[%s1994_s5 + $0x700] sm:$0xff] %v646_v32  ;;  %v650_v34 = vld [vmem:[%s1989_s4 + $0xe20] sm:$0xff]  ;;  %v652_v35 = vld [vmem:[%s1989_s4 + $0xe28] sm:$0xff]  ;;  %649 = vst [vmem:[%s1994_s5 + $0x708] sm:$0xff] %v648_v33 }
  0x8a   : > { %651 = vst [vmem:[%s1994_s5 + $0x710] sm:$0xff] %v650_v34  ;;  %653 = vst [vmem:[%s1994_s5 + $0x718] sm:$0xff] %v652_v35  ;;  %v654_v36 = vld [vmem:[%s1989_s4 + $0xe40] sm:$0xff]  ;;  %v656_v37 = vld [vmem:[%s1989_s4 + $0xe48] sm:$0xff] }
  0x8b   : > { %v658_v38 = vld [vmem:[%s1989_s4 + $0xe60] sm:$0xff]  ;;  %655 = vst [vmem:[%s1994_s5 + $0x720] sm:$0xff] %v654_v36  ;;  %657 = vst [vmem:[%s1994_s5 + $0x728] sm:$0xff] %v656_v37  ;;  %v660_v39 = vld [vmem:[%s1989_s4 + $0xe68] sm:$0xff] }
  0x8c   : > { %659 = vst [vmem:[%s1994_s5 + $0x730] sm:$0xff] %v658_v38  ;;  %v662_v40 = vld [vmem:[%s1989_s4 + $0xe80] sm:$0xff]  ;;  %v664_v41 = vld [vmem:[%s1989_s4 + $0xe88] sm:$0xff]  ;;  %661 = vst [vmem:[%s1994_s5 + $0x738] sm:$0xff] %v660_v39 }
  0x8d   : > { %663 = vst [vmem:[%s1994_s5 + $0x740] sm:$0xff] %v662_v40  ;;  %665 = vst [vmem:[%s1994_s5 + $0x748] sm:$0xff] %v664_v41  ;;  %v666_v42 = vld [vmem:[%s1989_s4 + $0xea0] sm:$0xff]  ;;  %v668_v43 = vld [vmem:[%s1989_s4 + $0xea8] sm:$0xff] }
  0x8e   : > { %v670_v44 = vld [vmem:[%s1989_s4 + $0xec0] sm:$0xff]  ;;  %667 = vst [vmem:[%s1994_s5 + $0x750] sm:$0xff] %v666_v42  ;;  %669 = vst [vmem:[%s1994_s5 + $0x758] sm:$0xff] %v668_v43  ;;  %v672_v45 = vld [vmem:[%s1989_s4 + $0xec8] sm:$0xff] }
  0x8f   : > { %671 = vst [vmem:[%s1994_s5 + $0x760] sm:$0xff] %v670_v44  ;;  %v674_v46 = vld [vmem:[%s1989_s4 + $0xee0] sm:$0xff]  ;;  %v676_v47 = vld [vmem:[%s1989_s4 + $0xee8] sm:$0xff]  ;;  %673 = vst [vmem:[%s1994_s5 + $0x768] sm:$0xff] %v672_v45 }
  0x90   : > { %675 = vst [vmem:[%s1994_s5 + $0x770] sm:$0xff] %v674_v46  ;;  %677 = vst [vmem:[%s1994_s5 + $0x778] sm:$0xff] %v676_v47  ;;  %v678_v48 = vld [vmem:[%s1989_s4 + $0xf00] sm:$0xff]  ;;  %v680_v49 = vld [vmem:[%s1989_s4 + $0xf08] sm:$0xff] }
  0x91   : > { %v682_v50 = vld [vmem:[%s1989_s4 + $0xf20] sm:$0xff]  ;;  %679 = vst [vmem:[%s1994_s5 + $0x780] sm:$0xff] %v678_v48  ;;  %681 = vst [vmem:[%s1994_s5 + $0x788] sm:$0xff] %v680_v49  ;;  %v684_v51 = vld [vmem:[%s1989_s4 + $0xf28] sm:$0xff] }
  0x92   : > { %683 = vst [vmem:[%s1994_s5 + $0x790] sm:$0xff] %v682_v50  ;;  %v686_v52 = vld [vmem:[%s1989_s4 + $0xf40] sm:$0xff]  ;;  %v688_v53 = vld [vmem:[%s1989_s4 + $0xf48] sm:$0xff]  ;;  %685 = vst [vmem:[%s1994_s5 + $0x798] sm:$0xff] %v684_v51 }
  0x93   : > { %687 = vst [vmem:[%s1994_s5 + $0x7a0] sm:$0xff] %v686_v52  ;;  %689 = vst [vmem:[%s1994_s5 + $0x7a8] sm:$0xff] %v688_v53  ;;  %v690_v54 = vld [vmem:[%s1989_s4 + $0xf60] sm:$0xff]  ;;  %v692_v55 = vld [vmem:[%s1989_s4 + $0xf68] sm:$0xff] }
  0x94   : > { %v694_v56 = vld [vmem:[%s1989_s4 + $0xf80] sm:$0xff]  ;;  %691 = vst [vmem:[%s1994_s5 + $0x7b0] sm:$0xff] %v690_v54  ;;  %693 = vst [vmem:[%s1994_s5 + $0x7b8] sm:$0xff] %v692_v55  ;;  %v696_v57 = vld [vmem:[%s1989_s4 + $0xf88] sm:$0xff] }
  0x95   : > { %695 = vst [vmem:[%s1994_s5 + $0x7c0] sm:$0xff] %v694_v56  ;;  %v698_v58 = vld [vmem:[%s1989_s4 + $0xfa0] sm:$0xff]  ;;  %v700_v59 = vld [vmem:[%s1989_s4 + $0xfa8] sm:$0xff]  ;;  %697 = vst [vmem:[%s1994_s5 + $0x7c8] sm:$0xff] %v696_v57 }
  0x96   : > { %699 = vst [vmem:[%s1994_s5 + $0x7d0] sm:$0xff] %v698_v58  ;;  %701 = vst [vmem:[%s1994_s5 + $0x7d8] sm:$0xff] %v700_v59  ;;  %v702_v60 = vld [vmem:[%s1989_s4 + $0xfc0] sm:$0xff]  ;;  %v704_v61 = vld [vmem:[%s1989_s4 + $0xfc8] sm:$0xff] }
  0x97   : > { %v706_v62 = vld [vmem:[%s1989_s4 + $0xfe0] sm:$0xff]  ;;  %703 = vst [vmem:[%s1994_s5 + $0x7e0] sm:$0xff] %v702_v60  ;;  %705 = vst [vmem:[%s1994_s5 + $0x7e8] sm:$0xff] %v704_v61  ;;  %v708_v63 = vld [vmem:[%s1989_s4 + $0xfe8] sm:$0xff] }
  0x98   : > { %707 = vst [vmem:[%s1994_s5 + $0x7f0] sm:$0xff] %v706_v62  ;;  %709 = vst [vmem:[%s1994_s5 + $0x7f8] sm:$0xff] %v708_v63 }
  0x99 PF: > { %p1498_p11 = scmp.ge.s32.totalorder %s1904_s17, 1  ;;  %p722_p12 = scmp.lt.s32.totalorder %s1904_s17, 3 }
  0x9b   : > { %p723_p13 = pnand %p1498_p11, %p722_p12 }
  0x9c   : > { %s2508_s6 = sand.u32 (!%p723_p13), 1, %s1888_s13   ;;  %v784_v0 = vld [vmem:[%s2851_s0 + $0x8] sm:$0xff] (!%p723_p13)  ;;  %s1501_s9 = sshll.u32 (!%p723_p13), %s1896_s15, 1 }
  0x9d   : > { %726 = sbr.rel (%p723_p13) target bundleno = 522 (0x20a), region = 51  ;;  %v788_v1 = vld [vmem:[%s2851_s0 + $0x28] sm:$0xff] (!%p723_p13)  ;;  %s1499_s11 = sshll.u32 (!%p723_p13), %s2508_s6, 11  ;;  %1111 = vmatprep.mubr.f32.mxu1 (!%p723_p13), %v784_v0 }
  0x9e   : > { %1253 = vmatprep.mubr.f32.mxu0 (!%p723_p13), %v788_v1  ;;  %s2517_s18 = scalar_lea.vmem (!%p723_p13), [#allocation2], %s1499_s11  ;;  %p778_p0 = scmp.lt.s32.totalorder (!%p723_p13), %s1501_s9, 3 }
  0x9f   : > { %v792_v2 = vld [vmem:[%s2517_s18 + $0x8] sm:$0xff] (!%p723_p13)  ;;  %v794_v3 = vld [vmem:[%s2517_s18 + $0x18] sm:$0xff] (!%p723_p13)  ;;  %v791_v7 = vld [vmem:[%s2517_s18] sm:$0xff] (!%p723_p13)  ;;  %s1500_s19 = sshll.u32 (!%p723_p13), %s2508_s6, 4  ;;  %s1508_s21 = sshll.u32 (!%p723_p13), %s1896_s15, 8 }
  0xa0   : > { %v920_v4 = vld [vmem:[%s2517_s18 + $0x408] sm:$0xff] (!%p723_p13)  ;;  %v1509_v5 = vpack.c.bf16 (!%p723_p13), %v794_v3, %v792_v2  ;;  %v922_v6 = vld [vmem:[%s2517_s18 + $0x418] sm:$0xff] (!%p723_p13)  ;;  %v793_v8 = vld [vmem:[%s2517_s18 + $0x10] sm:$0xff] (!%p723_p13)  ;;  %s764_s23 = scalar_lea.vmem (!%p723_p13), [#allocation3], %s1500_s19  ;;  %s2802_s29 = scalar_lea.hbm (!%p723_p13), %s2854_s3, %s1508_s21 }
  0xa1   : > { %v1637_v9 = vpack.c.bf16 (!%p723_p13), %v922_v6, %v920_v4  ;;  %v1511_v10 = vpack.c.bf16 (!%p723_p13), %v793_v8, %v791_v7  ;;  %v919_v11 = vld [vmem:[%s2517_s18 + $0x400] sm:$0xff] (!%p723_p13)  ;;  %v921_v12 = vld [vmem:[%s2517_s18 + $0x410] sm:$0xff] (!%p723_p13)  ;;  %v796_v13 = vld [vmem:[%s2517_s18 + $0x28] sm:$0xff] (!%p723_p13)  ;;  %s1378_s26 = sshll.u32 (!%p723_p13), %s764_s23, 4  ;;  %s1362_s30 = scalar_lea.sflag (!%p723_p13), [#allocation4], %s2508_s6  ;;  %s2804_s26 = int_to_ptr.vmem [resolvable:$true] %s1378_s26 }
  0xa2   : > { %1510 = vmatprep.subr.bf16.mxu1 (!%p723_p13), %v1509_v5  ;;  %v1639_v14 = vpack.c.bf16 (!%p723_p13), %v921_v12, %v919_v11  ;;  %v798_v15 = vld [vmem:[%s2517_s18 + $0x38] sm:$0xff] (!%p723_p13)  ;;  %v924_v16 = vld [vmem:[%s2517_s18 + $0x428] sm:$0xff] (!%p723_p13)  ;;  %v795_v20 = vld [vmem:[%s2517_s18 + $0x20] sm:$0xff] (!%p723_p13)  ;;  %s1826_s4 = scalar_lea.vmem (!%p723_p13), %s2804_s26, 256  ;;  %s1906_s15 = smov (!%p723_p13), [#allocation3]  }
  0xa3   : > { %v926_v17 = vld [vmem:[%s2517_s18 + $0x438] sm:$0xff] (!%p723_p13)  ;;  %1638 = vmatprep.subr.bf16.mxu0 (!%p723_p13), %v1637_v9  ;;  %1512 = vmatpush1.bf16.msra.mxu1 (!%p723_p13), %v1511_v10  ;;  %v1513_v18 = vpack.c.bf16 (!%p723_p13), %v798_v15, %v796_v13  ;;  %v797_v21 = vld [vmem:[%s2517_s18 + $0x30] sm:$0xff] (!%p723_p13)  ;;  %v923_v22 = vld [vmem:[%s2517_s18 + $0x420] sm:$0xff] (!%p723_p13)  ;;  %p1827_p1 = scmp.ne.s32.totalorder (!%p723_p13), %s2804_s26, %s1826_s4  ;;  %s1830_s5 = sshll.u32 (!%p723_p13), %s1906_s15, 4  ;;  %s1831_s5 = int_to_ptr.vmem [resolvable:$false] %s1830_s5 }
  0xa4   : > { %v1641_v19 = vpack.c.bf16 %v926_v17, %v924_v16  ;;  %1640 = vmatpush1.bf16.msra.mxu0 %v1639_v14  ;;  %v1515_v23 = vpack.c.bf16 %v797_v21, %v795_v20  ;;  %v925_v24 = vld [vmem:[%s2517_s18 + $0x430] sm:$0xff]  ;;  %v800_v25 = vld [vmem:[%s2517_s18 + $0x48] sm:$0xff]  ;;  %v802_v26 = vld [vmem:[%s2517_s18 + $0x58] sm:$0xff]  ;;  %s2865_s9 = smov (!%p778_p0, %s1501_s9), 3  ;;  %s1832_s7 = scalar_lea.vmem %s1831_s5, 512 }
  0xa5   : > { %1514 = vmatprep.subr.bf16.mxu1 %v1513_v18  ;;  %v1643_v27 = vpack.c.bf16 %v925_v24, %v923_v22  ;;  %v1517_v28 = vpack.c.bf16 %v802_v26, %v800_v25  ;;  %v928_v29 = vld [vmem:[%s2517_s18 + $0x448] sm:$0xff]  ;;  %v930_v30 = vld [vmem:[%s2517_s18 + $0x458] sm:$0xff]  ;;  %v799_v31 = vld [vmem:[%s2517_s18 + $0x40] sm:$0xff]  ;;  %p1828_p2 = pnand %p1827_p1, %p1966_p5  ;;  %p1833_p4 = scmp.lt.s32.totalorder %s2804_s26, %s1831_s5 }
  0xa6   : > { %1642 = vmatprep.subr.bf16.mxu0 %v1641_v19  ;;  %v1645_v32 = vpack.c.bf16 %v930_v30, %v928_v29  ;;  %v801_v33 = vld [vmem:[%s2517_s18 + $0x50] sm:$0xff]  ;;  %v927_v34 = vld [vmem:[%s2517_s18 + $0x440] sm:$0xff]  ;;  %v804_v37 = vld [vmem:[%s2517_s18 + $0x68] sm:$0xff]  ;;  %p1834_p6 = scmp.lt.s32.totalorder %s1832_s7, %s1826_s4 }
  0xa7   : > { %v929_v35 = vld [vmem:[%s2517_s18 + $0x450] sm:$0xff]  ;;  %1516 = vmatpush1.bf16.msra.mxu1 %v1515_v23  ;;  %v1519_v36 = vpack.c.bf16 %v801_v33, %v799_v31  ;;  %v806_v38 = vld [vmem:[%s2517_s18 + $0x78] sm:$0xff]  ;;  %v932_v39 = vld [vmem:[%s2517_s18 + $0x468] sm:$0xff]  ;;  %p1829_p3 = pneg %p1828_p2 }
  0xa8   : > { %1644 = vmatpush1.bf16.msra.mxu0 %v1643_v27  ;;  %1518 = vmatprep.subr.bf16.mxu1 %v1517_v28  ;;  %v1647_v40 = vpack.c.bf16 %v929_v35, %v927_v34  ;;  %v1521_v41 = vpack.c.bf16 %v806_v38, %v804_v37  ;;  %v934_v42 = vld [vmem:[%s2517_s18 + $0x478] sm:$0xff]  ;;  %v803_v43 = vld [vmem:[%s2517_s18 + $0x60] sm:$0xff]  ;;  %v805_v44 = vld [vmem:[%s2517_s18 + $0x70] sm:$0xff]  ;;  %p1835_p7 = por %p1834_p6, %p1833_p4 }
  0xa9   : > { %1646 = vmatprep.subr.bf16.mxu0 %v1645_v32  ;;  %v1649_v45 = vpack.c.bf16 %v934_v42, %v932_v39  ;;  %v931_v46 = vld [vmem:[%s2517_s18 + $0x460] sm:$0xff]  ;;  %v933_v47 = vld [vmem:[%s2517_s18 + $0x470] sm:$0xff]  ;;  %v808_v48 = vld [vmem:[%s2517_s18 + $0x88] sm:$0xff]  ;;  %v1523_v52 = vpack.c.bf16 %v805_v44, %v803_v43 }
  0xaa   : > { %v810_v49 = vld [vmem:[%s2517_s18 + $0x98] sm:$0xff]  ;;  %v936_v50 = vld [vmem:[%s2517_s18 + $0x488] sm:$0xff]  ;;  %v1651_v53 = vpack.c.bf16 %v933_v47, %v931_v46  ;;  %v807_v55 = vld [vmem:[%s2517_s18 + $0x80] sm:$0xff]  ;;  %p1836_p8 = pnand %p1835_p7, %p1829_p3 }
  0xab   : > { %v938_v51 = vld [vmem:[%s2517_s18 + $0x498] sm:$0xff]  ;;  %1520 = vmatpush1.bf16.msra.mxu1 %v1519_v36  ;;  %v1525_v54 = vpack.c.bf16 %v810_v49, %v808_v48  ;;  %v809_v56 = vld [vmem:[%s2517_s18 + $0x90] sm:$0xff]  ;;  %v935_v57 = vld [vmem:[%s2517_s18 + $0x480] sm:$0xff] }
  0xac   : > { %1648 = vmatpush1.bf16.msra.mxu0 %v1647_v40  ;;  %1522 = vmatprep.subr.bf16.mxu1 %v1521_v41  ;;  %v1653_v58 = vpack.c.bf16 %v938_v51, %v936_v50  ;;  %v937_v59 = vld [vmem:[%s2517_s18 + $0x490] sm:$0xff]  ;;  %v812_v60 = vld [vmem:[%s2517_s18 + $0xa8] sm:$0xff]  ;;  %v814_v61 = vld [vmem:[%s2517_s18 + $0xb8] sm:$0xff]  ;;  %v1527_v0 = vpack.c.bf16 %v809_v56, %v807_v55 }
  0xad   : > { %1650 = vmatprep.subr.bf16.mxu0 %v1649_v45  ;;  %v940_v62 = vld [vmem:[%s2517_s18 + $0x4a8] sm:$0xff]  ;;  %v942_v63 = vld [vmem:[%s2517_s18 + $0x4b8] sm:$0xff]  ;;  %v1655_v1 = vpack.c.bf16 %v937_v59, %v935_v57  ;;  %v1529_v2 = vpack.c.bf16 %v814_v61, %v812_v60  ;;  %v811_v3 = vld [vmem:[%s2517_s18 + $0xa0] sm:$0xff] }
  0xae   : > { %v813_v4 = vld [vmem:[%s2517_s18 + $0xb0] sm:$0xff]  ;;  %v939_v5 = vld [vmem:[%s2517_s18 + $0x4a0] sm:$0xff]  ;;  %v1657_v6 = vpack.c.bf16 %v942_v63, %v940_v62  ;;  %v816_v8 = vld [vmem:[%s2517_s18 + $0xc8] sm:$0xff] }
  0xaf   : > { %1524 = vmatpush1.bf16.msra.mxu1 %v1523_v52  ;;  %v941_v7 = vld [vmem:[%s2517_s18 + $0x4b0] sm:$0xff]  ;;  %v818_v9 = vld [vmem:[%s2517_s18 + $0xd8] sm:$0xff]  ;;  %v944_v10 = vld [vmem:[%s2517_s18 + $0x4c8] sm:$0xff]  ;;  %v1531_v12 = vpack.c.bf16 %v813_v4, %v811_v3 }
  0xb0   : > { %1652 = vmatpush1.bf16.msra.mxu0 %v1651_v53  ;;  %1526 = vmatprep.subr.bf16.mxu1 %v1525_v54  ;;  %v946_v11 = vld [vmem:[%s2517_s18 + $0x4d8] sm:$0xff]  ;;  %v1659_v13 = vpack.c.bf16 %v941_v7, %v939_v5  ;;  %v1533_v14 = vpack.c.bf16 %v818_v9, %v816_v8  ;;  %v815_v15 = vld [vmem:[%s2517_s18 + $0xc0] sm:$0xff]  ;;  %v817_v16 = vld [vmem:[%s2517_s18 + $0xd0] sm:$0xff] }
  0xb1   : > { %1654 = vmatprep.subr.bf16.mxu0 %v1653_v58  ;;  %v943_v17 = vld [vmem:[%s2517_s18 + $0x4c0] sm:$0xff]  ;;  %v1661_v18 = vpack.c.bf16 %v946_v11, %v944_v10  ;;  %v945_v19 = vld [vmem:[%s2517_s18 + $0x4d0] sm:$0xff]  ;;  %v820_v20 = vld [vmem:[%s2517_s18 + $0xe8] sm:$0xff]  ;;  %v1535_v24 = vpack.c.bf16 %v817_v16, %v815_v15 }
  0xb2   : > { %v822_v21 = vld [vmem:[%s2517_s18 + $0xf8] sm:$0xff]  ;;  %v948_v22 = vld [vmem:[%s2517_s18 + $0x4e8] sm:$0xff]  ;;  %v1663_v25 = vpack.c.bf16 %v945_v19, %v943_v17  ;;  %v819_v27 = vld [vmem:[%s2517_s18 + $0xe0] sm:$0xff] }
  0xb3   : > { %1528 = vmatpush1.bf16.msra.mxu1 %v1527_v0  ;;  %v950_v23 = vld [vmem:[%s2517_s18 + $0x4f8] sm:$0xff]  ;;  %v1537_v26 = vpack.c.bf16 %v822_v21, %v820_v20  ;;  %v821_v28 = vld [vmem:[%s2517_s18 + $0xf0] sm:$0xff]  ;;  %v947_v29 = vld [vmem:[%s2517_s18 + $0x4e0] sm:$0xff] }
  0xb4   : > { %1656 = vmatpush1.bf16.msra.mxu0 %v1655_v1  ;;  %1530 = vmatprep.subr.bf16.mxu1 %v1529_v2  ;;  %v1665_v30 = vpack.c.bf16 %v950_v23, %v948_v22  ;;  %v949_v31 = vld [vmem:[%s2517_s18 + $0x4f0] sm:$0xff]  ;;  %v824_v32 = vld [vmem:[%s2517_s18 + $0x108] sm:$0xff]  ;;  %v826_v33 = vld [vmem:[%s2517_s18 + $0x118] sm:$0xff]  ;;  %v1539_v36 = vpack.c.bf16 %v821_v28, %v819_v27 }
  0xb5   : > { %1658 = vmatprep.subr.bf16.mxu0 %v1657_v6  ;;  %v952_v34 = vld [vmem:[%s2517_s18 + $0x508] sm:$0xff]  ;;  %v954_v35 = vld [vmem:[%s2517_s18 + $0x518] sm:$0xff]  ;;  %v1667_v37 = vpack.c.bf16 %v949_v31, %v947_v29  ;;  %v1541_v38 = vpack.c.bf16 %v826_v33, %v824_v32  ;;  %v823_v39 = vld [vmem:[%s2517_s18 + $0x100] sm:$0xff] }
  0xb6   : > { %v825_v40 = vld [vmem:[%s2517_s18 + $0x110] sm:$0xff]  ;;  %v951_v41 = vld [vmem:[%s2517_s18 + $0x500] sm:$0xff]  ;;  %v1669_v42 = vpack.c.bf16 %v954_v35, %v952_v34  ;;  %v828_v44 = vld [vmem:[%s2517_s18 + $0x128] sm:$0xff] }
  0xb7   : > { %1532 = vmatpush1.bf16.msra.mxu1 %v1531_v12  ;;  %v953_v43 = vld [vmem:[%s2517_s18 + $0x510] sm:$0xff]  ;;  %v830_v45 = vld [vmem:[%s2517_s18 + $0x138] sm:$0xff]  ;;  %v956_v46 = vld [vmem:[%s2517_s18 + $0x528] sm:$0xff]  ;;  %v1543_v48 = vpack.c.bf16 %v825_v40, %v823_v39 }
  0xb8   : > { %1660 = vmatpush1.bf16.msra.mxu0 %v1659_v13  ;;  %1534 = vmatprep.subr.bf16.mxu1 %v1533_v14  ;;  %v958_v47 = vld [vmem:[%s2517_s18 + $0x538] sm:$0xff]  ;;  %v1671_v49 = vpack.c.bf16 %v953_v43, %v951_v41  ;;  %v1545_v50 = vpack.c.bf16 %v830_v45, %v828_v44  ;;  %v827_v51 = vld [vmem:[%s2517_s18 + $0x120] sm:$0xff]  ;;  %v829_v52 = vld [vmem:[%s2517_s18 + $0x130] sm:$0xff] }
  0xb9   : > { %1662 = vmatprep.subr.bf16.mxu0 %v1661_v18  ;;  %v955_v53 = vld [vmem:[%s2517_s18 + $0x520] sm:$0xff]  ;;  %v1673_v54 = vpack.c.bf16 %v958_v47, %v956_v46  ;;  %v957_v55 = vld [vmem:[%s2517_s18 + $0x530] sm:$0xff]  ;;  %v832_v56 = vld [vmem:[%s2517_s18 + $0x148] sm:$0xff]  ;;  %v1547_v60 = vpack.c.bf16 %v829_v52, %v827_v51 }
  0xba   : > { %v834_v57 = vld [vmem:[%s2517_s18 + $0x158] sm:$0xff]  ;;  %v960_v58 = vld [vmem:[%s2517_s18 + $0x548] sm:$0xff]  ;;  %v1675_v61 = vpack.c.bf16 %v957_v55, %v955_v53  ;;  %v831_v63 = vld [vmem:[%s2517_s18 + $0x140] sm:$0xff] }
  0xbb   : > { %1536 = vmatpush1.bf16.msra.mxu1 %v1535_v24  ;;  %v962_v59 = vld [vmem:[%s2517_s18 + $0x558] sm:$0xff]  ;;  %v1549_v62 = vpack.c.bf16 %v834_v57, %v832_v56  ;;  %v833_v0 = vld [vmem:[%s2517_s18 + $0x150] sm:$0xff]  ;;  %v959_v1 = vld [vmem:[%s2517_s18 + $0x540] sm:$0xff] }
  0xbc   : > { %1664 = vmatpush1.bf16.msra.mxu0 %v1663_v25  ;;  %1538 = vmatprep.subr.bf16.mxu1 %v1537_v26  ;;  %v1677_v2 = vpack.c.bf16 %v962_v59, %v960_v58  ;;  %v961_v3 = vld [vmem:[%s2517_s18 + $0x550] sm:$0xff]  ;;  %v836_v4 = vld [vmem:[%s2517_s18 + $0x168] sm:$0xff]  ;;  %v838_v5 = vld [vmem:[%s2517_s18 + $0x178] sm:$0xff]  ;;  %v1551_v8 = vpack.c.bf16 %v833_v0, %v831_v63 }
  0xbd   : > { %1666 = vmatprep.subr.bf16.mxu0 %v1665_v30  ;;  %v964_v6 = vld [vmem:[%s2517_s18 + $0x568] sm:$0xff]  ;;  %v966_v7 = vld [vmem:[%s2517_s18 + $0x578] sm:$0xff]  ;;  %v1679_v9 = vpack.c.bf16 %v961_v3, %v959_v1  ;;  %v1553_v10 = vpack.c.bf16 %v838_v5, %v836_v4  ;;  %v835_v11 = vld [vmem:[%s2517_s18 + $0x160] sm:$0xff] }
  0xbe   : > { %v837_v12 = vld [vmem:[%s2517_s18 + $0x170] sm:$0xff]  ;;  %v963_v13 = vld [vmem:[%s2517_s18 + $0x560] sm:$0xff]  ;;  %v1681_v14 = vpack.c.bf16 %v966_v7, %v964_v6  ;;  %v840_v16 = vld [vmem:[%s2517_s18 + $0x188] sm:$0xff] }
  0xbf   : > { %1540 = vmatpush1.bf16.msra.mxu1 %v1539_v36  ;;  %v965_v15 = vld [vmem:[%s2517_s18 + $0x570] sm:$0xff]  ;;  %v842_v17 = vld [vmem:[%s2517_s18 + $0x198] sm:$0xff]  ;;  %v968_v18 = vld [vmem:[%s2517_s18 + $0x588] sm:$0xff]  ;;  %v1555_v20 = vpack.c.bf16 %v837_v12, %v835_v11 }
  0xc0   : > { %1668 = vmatpush1.bf16.msra.mxu0 %v1667_v37  ;;  %1542 = vmatprep.subr.bf16.mxu1 %v1541_v38  ;;  %v970_v19 = vld [vmem:[%s2517_s18 + $0x598] sm:$0xff]  ;;  %v1683_v21 = vpack.c.bf16 %v965_v15, %v963_v13  ;;  %v1557_v22 = vpack.c.bf16 %v842_v17, %v840_v16  ;;  %v839_v23 = vld [vmem:[%s2517_s18 + $0x180] sm:$0xff]  ;;  %v841_v24 = vld [vmem:[%s2517_s18 + $0x190] sm:$0xff] }
  0xc1   : > { %1670 = vmatprep.subr.bf16.mxu0 %v1669_v42  ;;  %v967_v25 = vld [vmem:[%s2517_s18 + $0x580] sm:$0xff]  ;;  %v1685_v26 = vpack.c.bf16 %v970_v19, %v968_v18  ;;  %v969_v27 = vld [vmem:[%s2517_s18 + $0x590] sm:$0xff]  ;;  %v844_v28 = vld [vmem:[%s2517_s18 + $0x1a8] sm:$0xff]  ;;  %v1559_v32 = vpack.c.bf16 %v841_v24, %v839_v23 }
  0xc2   : > { %v846_v29 = vld [vmem:[%s2517_s18 + $0x1b8] sm:$0xff]  ;;  %v972_v30 = vld [vmem:[%s2517_s18 + $0x5a8] sm:$0xff]  ;;  %v1687_v33 = vpack.c.bf16 %v969_v27, %v967_v25  ;;  %v843_v35 = vld [vmem:[%s2517_s18 + $0x1a0] sm:$0xff] }
  0xc3   : > { %1544 = vmatpush1.bf16.msra.mxu1 %v1543_v48  ;;  %v974_v31 = vld [vmem:[%s2517_s18 + $0x5b8] sm:$0xff]  ;;  %v1561_v34 = vpack.c.bf16 %v846_v29, %v844_v28  ;;  %v845_v36 = vld [vmem:[%s2517_s18 + $0x1b0] sm:$0xff]  ;;  %v971_v37 = vld [vmem:[%s2517_s18 + $0x5a0] sm:$0xff] }
  0xc4   : > { %1672 = vmatpush1.bf16.msra.mxu0 %v1671_v49  ;;  %1546 = vmatprep.subr.bf16.mxu1 %v1545_v50  ;;  %v1689_v38 = vpack.c.bf16 %v974_v31, %v972_v30  ;;  %v973_v39 = vld [vmem:[%s2517_s18 + $0x5b0] sm:$0xff]  ;;  %v848_v40 = vld [vmem:[%s2517_s18 + $0x1c8] sm:$0xff]  ;;  %v850_v41 = vld [vmem:[%s2517_s18 + $0x1d8] sm:$0xff]  ;;  %v1563_v44 = vpack.c.bf16 %v845_v36, %v843_v35 }
  0xc5   : > { %1674 = vmatprep.subr.bf16.mxu0 %v1673_v54  ;;  %v976_v42 = vld [vmem:[%s2517_s18 + $0x5c8] sm:$0xff]  ;;  %v978_v43 = vld [vmem:[%s2517_s18 + $0x5d8] sm:$0xff]  ;;  %v1691_v45 = vpack.c.bf16 %v973_v39, %v971_v37  ;;  %v1565_v46 = vpack.c.bf16 %v850_v41, %v848_v40  ;;  %v847_v47 = vld [vmem:[%s2517_s18 + $0x1c0] sm:$0xff] }
  0xc6   : > { %v849_v48 = vld [vmem:[%s2517_s18 + $0x1d0] sm:$0xff]  ;;  %v975_v49 = vld [vmem:[%s2517_s18 + $0x5c0] sm:$0xff]  ;;  %v1693_v50 = vpack.c.bf16 %v978_v43, %v976_v42  ;;  %v852_v52 = vld [vmem:[%s2517_s18 + $0x1e8] sm:$0xff] }
  0xc7   : > { %1548 = vmatpush1.bf16.msra.mxu1 %v1547_v60  ;;  %v977_v51 = vld [vmem:[%s2517_s18 + $0x5d0] sm:$0xff]  ;;  %v854_v53 = vld [vmem:[%s2517_s18 + $0x1f8] sm:$0xff]  ;;  %v980_v54 = vld [vmem:[%s2517_s18 + $0x5e8] sm:$0xff]  ;;  %v1567_v56 = vpack.c.bf16 %v849_v48, %v847_v47 }
  0xc8   : > { %1676 = vmatpush1.bf16.msra.mxu0 %v1675_v61  ;;  %1550 = vmatprep.subr.bf16.mxu1 %v1549_v62  ;;  %v982_v55 = vld [vmem:[%s2517_s18 + $0x5f8] sm:$0xff]  ;;  %v1695_v57 = vpack.c.bf16 %v977_v51, %v975_v49  ;;  %v1569_v58 = vpack.c.bf16 %v854_v53, %v852_v52  ;;  %v851_v59 = vld [vmem:[%s2517_s18 + $0x1e0] sm:$0xff]  ;;  %v853_v60 = vld [vmem:[%s2517_s18 + $0x1f0] sm:$0xff] }
  0xc9   : > { %1678 = vmatprep.subr.bf16.mxu0 %v1677_v2  ;;  %v979_v61 = vld [vmem:[%s2517_s18 + $0x5e0] sm:$0xff]  ;;  %v1697_v62 = vpack.c.bf16 %v982_v55, %v980_v54  ;;  %v981_v63 = vld [vmem:[%s2517_s18 + $0x5f0] sm:$0xff]  ;;  %v856_v0 = vld [vmem:[%s2517_s18 + $0x208] sm:$0xff]  ;;  %v1571_v4 = vpack.c.bf16 %v853_v60, %v851_v59 }
  0xca   : > { %v858_v1 = vld [vmem:[%s2517_s18 + $0x218] sm:$0xff]  ;;  %v984_v2 = vld [vmem:[%s2517_s18 + $0x608] sm:$0xff]  ;;  %v1699_v5 = vpack.c.bf16 %v981_v63, %v979_v61  ;;  %v855_v7 = vld [vmem:[%s2517_s18 + $0x200] sm:$0xff] }
  0xcb   : > { %1552 = vmatpush1.bf16.msra.mxu1 %v1551_v8  ;;  %v986_v3 = vld [vmem:[%s2517_s18 + $0x618] sm:$0xff]  ;;  %v1573_v6 = vpack.c.bf16 %v858_v1, %v856_v0  ;;  %v857_v8 = vld [vmem:[%s2517_s18 + $0x210] sm:$0xff]  ;;  %v860_v12 = vld [vmem:[%s2517_s18 + $0x228] sm:$0xff] }
  0xcc   : > { %1680 = vmatpush1.bf16.msra.mxu0 %v1679_v9  ;;  %1554 = vmatprep.subr.bf16.mxu1 %v1553_v10  ;;  %v983_v9 = vld [vmem:[%s2517_s18 + $0x600] sm:$0xff]  ;;  %v1701_v10 = vpack.c.bf16 %v986_v3, %v984_v2  ;;  %v985_v11 = vld [vmem:[%s2517_s18 + $0x610] sm:$0xff]  ;;  %v862_v13 = vld [vmem:[%s2517_s18 + $0x238] sm:$0xff]  ;;  %v1575_v17 = vpack.c.bf16 %v857_v8, %v855_v7 }
  0xcd   : > { %1682 = vmatprep.subr.bf16.mxu0 %v1681_v14  ;;  %v988_v14 = vld [vmem:[%s2517_s18 + $0x628] sm:$0xff]  ;;  %v990_v15 = vld [vmem:[%s2517_s18 + $0x638] sm:$0xff]  ;;  %v783_v16 = vld [vmem:[%s2851_s0] sm:$0xff]  ;;  %v1703_v19 = vpack.c.bf16 %v985_v11, %v983_v9 }
  0xce   : > { %v787_v18 = vld [vmem:[%s2851_s0 + $0x20] sm:$0xff]  ;;  %v1705_v24 = vpack.c.bf16 %v990_v15, %v988_v14  ;;  %v989_v25 = vld [vmem:[%s2517_s18 + $0x630] sm:$0xff]  ;;  %v866_v27 = vld [vmem:[%s2517_s18 + $0x258] sm:$0xff] }
  0xcf   : > { %1556 = vmatpush1.bf16.msra.mxu1 %v1555_v20  ;;  %v1577_v20 = vpack.c.bf16 %v862_v13, %v860_v12  ;;  %v987_v23 = vld [vmem:[%s2517_s18 + $0x620] sm:$0xff]  ;;  %v992_v28 = vld [vmem:[%s2517_s18 + $0x648] sm:$0xff]  ;;  %v994_v29 = vld [vmem:[%s2517_s18 + $0x658] sm:$0xff] }
  0xd0   : > { %1684 = vmatpush1.bf16.msra.mxu0 %v1683_v21  ;;  %1558 = vmatprep.subr.bf16.mxu1 %v1557_v22  ;;  %v859_v21 = vld [vmem:[%s2517_s18 + $0x220] sm:$0xff]  ;;  %v861_v22 = vld [vmem:[%s2517_s18 + $0x230] sm:$0xff]  ;;  %v1707_v31 = vpack.c.bf16 %v989_v25, %v987_v23  ;;  %v1709_v36 = vpack.c.bf16 %v994_v29, %v992_v28  ;;  %v870_v39 = vld [vmem:[%s2517_s18 + $0x278] sm:$0xff] }
  0xd1   : > { %1686 = vmatprep.subr.bf16.mxu0 %v1685_v26  ;;  %v864_v26 = vld [vmem:[%s2517_s18 + $0x248] sm:$0xff]  ;;  %v1579_v30 = vpack.c.bf16 %v861_v22, %v859_v21  ;;  %v991_v35 = vld [vmem:[%s2517_s18 + $0x640] sm:$0xff]  ;;  %v993_v37 = vld [vmem:[%s2517_s18 + $0x650] sm:$0xff] }
  0xd2   : > { %v996_v40 = vld [vmem:[%s2517_s18 + $0x668] sm:$0xff]  ;;  %v998_v41 = vld [vmem:[%s2517_s18 + $0x678] sm:$0xff]  ;;  %v1711_v43 = vpack.c.bf16 %v993_v37, %v991_v35  ;;  %v995_v47 = vld [vmem:[%s2517_s18 + $0x660] sm:$0xff] }
  0xd3   : > { %1560 = vmatpush1.bf16.msra.mxu1 %v1559_v32  ;;  %v1581_v32 = vpack.c.bf16 %v866_v27, %v864_v26  ;;  %v1713_v48 = vpack.c.bf16 %v998_v41, %v996_v40  ;;  %v997_v49 = vld [vmem:[%s2517_s18 + $0x670] sm:$0xff]  ;;  %v874_v51 = vld [vmem:[%s2517_s18 + $0x298] sm:$0xff]  ;;  %v1000_v52 = vld [vmem:[%s2517_s18 + $0x688] sm:$0xff] }
  0xd4   : > { %1688 = vmatpush1.bf16.msra.mxu0 %v1687_v33  ;;  %1562 = vmatprep.subr.bf16.mxu1 %v1561_v34  ;;  %v863_v33 = vld [vmem:[%s2517_s18 + $0x240] sm:$0xff]  ;;  %v865_v34 = vld [vmem:[%s2517_s18 + $0x250] sm:$0xff]  ;;  %v1002_v53 = vld [vmem:[%s2517_s18 + $0x698] sm:$0xff]  ;;  %v1715_v55 = vpack.c.bf16 %v997_v49, %v995_v47 }
  0xd5   : > { %1690 = vmatprep.subr.bf16.mxu0 %v1689_v38  ;;  %v868_v38 = vld [vmem:[%s2517_s18 + $0x268] sm:$0xff]  ;;  %v1583_v42 = vpack.c.bf16 %v865_v34, %v863_v33  ;;  %v999_v59 = vld [vmem:[%s2517_s18 + $0x680] sm:$0xff]  ;;  %v1717_v60 = vpack.c.bf16 %v1002_v53, %v1000_v52  ;;  %v1001_v61 = vld [vmem:[%s2517_s18 + $0x690] sm:$0xff] }
  0xd6   : > { %v878_v63 = vld [vmem:[%s2517_s18 + $0x2b8] sm:$0xff]  ;;  %v1004_v0 = vld [vmem:[%s2517_s18 + $0x6a8] sm:$0xff]  ;;  %v1719_v3 = vpack.c.bf16 %v1001_v61, %v999_v59  ;;  %v1003_v7 = vld [vmem:[%s2517_s18 + $0x6a0] sm:$0xff] }
  0xd7   : > { %1564 = vmatpush1.bf16.msra.mxu1 %v1563_v44  ;;  %v1585_v44 = vpack.c.bf16 %v870_v39, %v868_v38  ;;  %v1006_v1 = vld [vmem:[%s2517_s18 + $0x6b8] sm:$0xff]  ;;  %v1005_v9 = vld [vmem:[%s2517_s18 + $0x6b0] sm:$0xff]  ;;  %v1008_v12 = vld [vmem:[%s2517_s18 + $0x6c8] sm:$0xff] }
  0xd8   : > { %1692 = vmatpush1.bf16.msra.mxu0 %v1691_v45  ;;  %1566 = vmatprep.subr.bf16.mxu1 %v1565_v46  ;;  %v867_v45 = vld [vmem:[%s2517_s18 + $0x260] sm:$0xff]  ;;  %v869_v46 = vld [vmem:[%s2517_s18 + $0x270] sm:$0xff]  ;;  %v1721_v8 = vpack.c.bf16 %v1006_v1, %v1004_v0  ;;  %v882_v11 = vld [vmem:[%s2517_s18 + $0x2d8] sm:$0xff] }
  0xd9   : > { %1694 = vmatprep.subr.bf16.mxu0 %v1693_v50  ;;  %v872_v50 = vld [vmem:[%s2517_s18 + $0x288] sm:$0xff]  ;;  %v1587_v54 = vpack.c.bf16 %v869_v46, %v867_v45  ;;  %v1010_v13 = vld [vmem:[%s2517_s18 + $0x6d8] sm:$0xff]  ;;  %v879_v15 = vld [vmem:[%s2517_s18 + $0x2c0] sm:$0xff] }
  0xda   : > { %v790_v21 = vld [vmem:[%s2851_s0 + $0x38] sm:$0xff]  ;;  %v1725_v22 = vpack.c.bf16 %v1010_v13, %v1008_v12  ;;  %v1009_v23 = vld [vmem:[%s2517_s18 + $0x6d0] sm:$0xff]  ;;  %v1012_v26 = vld [vmem:[%s2517_s18 + $0x6e8] sm:$0xff] }
  0xdb   : > { %1568 = vmatpush1.bf16.msra.mxu1 %v1567_v56  ;;  %v1589_v56 = vpack.c.bf16 %v874_v51, %v872_v50  ;;  %v886_v25 = vld [vmem:[%s2517_s18 + $0x2f8] sm:$0xff]  ;;  %v1011_v33 = vld [vmem:[%s2517_s18 + $0x6e0] sm:$0xff]  ;;  %v1013_v35 = vld [vmem:[%s2517_s18 + $0x6f0] sm:$0xff] }
  0xdc   : > { %1696 = vmatpush1.bf16.msra.mxu0 %v1695_v57  ;;  %1570 = vmatprep.subr.bf16.mxu1 %v1569_v58  ;;  %v871_v57 = vld [vmem:[%s2517_s18 + $0x280] sm:$0xff]  ;;  %v873_v58 = vld [vmem:[%s2517_s18 + $0x290] sm:$0xff]  ;;  %v1014_v27 = vld [vmem:[%s2517_s18 + $0x6f8] sm:$0xff]  ;;  %v1731_v41 = vpack.c.bf16 %v1013_v35, %v1011_v33 }
  0xdd   : > { %1698 = vmatprep.subr.bf16.mxu0 %v1697_v62  ;;  %v876_v62 = vld [vmem:[%s2517_s18 + $0x2a8] sm:$0xff]  ;;  %v1591_v2 = vpack.c.bf16 %v873_v58, %v871_v57  ;;  %v1729_v34 = vpack.c.bf16 %v1014_v27, %v1012_v26  ;;  %v890_v37 = vld [vmem:[%s2517_s18 + $0x318] sm:$0xff]  ;;  %v1015_v45 = vld [vmem:[%s2517_s18 + $0x700] sm:$0xff] }
  0xde   : > { %v1016_v38 = vld [vmem:[%s2517_s18 + $0x708] sm:$0xff]  ;;  %v1018_v39 = vld [vmem:[%s2517_s18 + $0x718] sm:$0xff]  ;;  %v1017_v47 = vld [vmem:[%s2517_s18 + $0x710] sm:$0xff] }
  0xdf   : > { %1572 = vmatpush1.bf16.msra.mxu1 %v1571_v4  ;;  %v1593_v4 = vpack.c.bf16 %v878_v63, %v876_v62  ;;  %v1733_v46 = vpack.c.bf16 %v1018_v39, %v1016_v38  ;;  %v894_v49 = vld [vmem:[%s2517_s18 + $0x338] sm:$0xff]  ;;  %v1020_v50 = vld [vmem:[%s2517_s18 + $0x728] sm:$0xff]  ;;  %v1735_v53 = vpack.c.bf16 %v1017_v47, %v1015_v45  ;;  %v1019_v57 = vld [vmem:[%s2517_s18 + $0x720] sm:$0xff] }
  0xe0   : > { %1700 = vmatpush1.bf16.msra.mxu0 %v1699_v5  ;;  %1574 = vmatprep.subr.bf16.mxu1 %v1573_v6  ;;  %v875_v5 = vld [vmem:[%s2517_s18 + $0x2a0] sm:$0xff]  ;;  %v877_v6 = vld [vmem:[%s2517_s18 + $0x2b0] sm:$0xff]  ;;  %v1022_v51 = vld [vmem:[%s2517_s18 + $0x738] sm:$0xff] }
  0xe1   : > { %1702 = vmatprep.subr.bf16.mxu0 %v1701_v10  ;;  %v880_v10 = vld [vmem:[%s2517_s18 + $0x2c8] sm:$0xff]  ;;  %v1595_v14 = vpack.c.bf16 %v877_v6, %v875_v5  ;;  %v1737_v58 = vpack.c.bf16 %v1022_v51, %v1020_v50  ;;  %v1021_v59 = vld [vmem:[%s2517_s18 + $0x730] sm:$0xff]  ;;  %v898_v61 = vld [vmem:[%s2517_s18 + $0x358] sm:$0xff] }
  0xe2   : > { %1112 = vmatmul.mubr.f32.vlgmr.msra.gmra.mrb[0].mxu1 %v783_v16  ;;  %v881_v16 = vld [vmem:[%s2517_s18 + $0x2d0] sm:$0xff]  ;;  %v1024_v62 = vld [vmem:[%s2517_s18 + $0x748] sm:$0xff]  ;;  %v1026_v63 = vld [vmem:[%s2517_s18 + $0x758] sm:$0xff]  ;;  %v1739_v1 = vpack.c.bf16 %v1021_v59, %v1019_v57 }
  0xe3   : > { %1576 = vmatpush1.bf16.msra.mxu1 %v1575_v17  ;;  %1254 = vmatmul.mubr.f32.vlgmr.msra.gmra.mrb[0].mxu0 %v787_v18  ;;  %v1723_v17 = vpack.c.bf16 %v1005_v9, %v1003_v7  ;;  %v1597_v18 = vpack.c.bf16 %v882_v11, %v880_v10  ;;  %v1599_v28 = vpack.c.bf16 %v881_v16, %v879_v15  ;;  %v1023_v5 = vld [vmem:[%s2517_s18 + $0x740] sm:$0xff]  ;;  %v1025_v7 = vld [vmem:[%s2517_s18 + $0x750] sm:$0xff]  ;;  %v902_v9 = vld [vmem:[%s2517_s18 + $0x378] sm:$0xff] }
  0xe4   : > { %1704 = vmatpush1.bf16.msra.mxu0 %v1703_v19  ;;  %1578 = vmatprep.subr.bf16.mxu1 %v1577_v20  ;;  %v1007_v19 = vld [vmem:[%s2517_s18 + $0x6c0] sm:$0xff]  ;;  %v786_v20 = vld [vmem:[%s2851_s0 + $0x18] sm:$0xff]  ;;  %v1741_v6 = vpack.c.bf16 %v1026_v63, %v1024_v62  ;;  %v1028_v10 = vld [vmem:[%s2517_s18 + $0x768] sm:$0xff]  ;;  %v1743_v13 = vpack.c.bf16 %v1025_v7, %v1023_v5 }
  0xe5   : > { %1706 = vmatprep.subr.bf16.mxu0 %v1705_v24  ;;  %v884_v24 = vld [vmem:[%s2517_s18 + $0x2e8] sm:$0xff]  ;;  %1182 = vmatprep.mubr.f32.mxu1 %v786_v20  ;;  %v1727_v29 = vpack.c.bf16 %v1009_v23, %v1007_v19  ;;  %v1030_v11 = vld [vmem:[%s2517_s18 + $0x778] sm:$0xff]  ;;  %v899_v15 = vld [vmem:[%s2517_s18 + $0x360] sm:$0xff] }
  0xe6   : > { %1324 = vmatprep.mubr.f32.mxu0 %v790_v21  ;;  %v901_v16 = vld [vmem:[%s2517_s18 + $0x370] sm:$0xff]  ;;  %v904_v20 = vld [vmem:[%s2517_s18 + $0x388] sm:$0xff]  ;;  %v906_v21 = vld [vmem:[%s2517_s18 + $0x398] sm:$0xff] }
  0xe7   : > { %1580 = vmatpush1.bf16.msra.mxu1 %v1579_v30  ;;  %v1601_v30 = vpack.c.bf16 %v886_v25, %v884_v24  ;;  %v1029_v19 = vld [vmem:[%s2517_s18 + $0x770] sm:$0xff]  ;;  %v1034_v23 = vld [vmem:[%s2517_s18 + $0x798] sm:$0xff]  ;;  %v1619_v24 = vpack.c.bf16 %v901_v16, %v899_v15  ;;  %v1621_v26 = vpack.c.bf16 %v906_v21, %v904_v20  ;;  %v903_v27 = vld [vmem:[%s2517_s18 + $0x380] sm:$0xff] }
  0xe8   : > { %1708 = vmatpush1.bf16.msra.mxu0 %v1707_v31  ;;  %1582 = vmatprep.subr.bf16.mxu1 %v1581_v32  ;;  %v883_v31 = vld [vmem:[%s2517_s18 + $0x2e0] sm:$0xff]  ;;  %v885_v32 = vld [vmem:[%s2517_s18 + $0x2f0] sm:$0xff]  ;;  %v910_v33 = vld [vmem:[%s2517_s18 + $0x3b8] sm:$0xff] }
  0xe9   : > { %1710 = vmatprep.subr.bf16.mxu0 %v1709_v36  ;;  %v888_v36 = vld [vmem:[%s2517_s18 + $0x308] sm:$0xff]  ;;  %v1603_v40 = vpack.c.bf16 %v885_v32, %v883_v31  ;;  %v1033_v31 = vld [vmem:[%s2517_s18 + $0x790] sm:$0xff]  ;;  %v1038_v35 = vld [vmem:[%s2517_s18 + $0x7b8] sm:$0xff] }
  0xea   : > { %v908_v32 = vld [vmem:[%s2517_s18 + $0x3a8] sm:$0xff]  ;;  %v907_v39 = vld [vmem:[%s2517_s18 + $0x3a0] sm:$0xff]  ;;  %v914_v45 = vld [vmem:[%s2517_s18 + $0x3d8] sm:$0xff] }
  0xeb   : > { %1584 = vmatpush1.bf16.msra.mxu1 %v1583_v42  ;;  %v1605_v42 = vpack.c.bf16 %v890_v37, %v888_v36  ;;  %v1625_v38 = vpack.c.bf16 %v910_v33, %v908_v32  ;;  %v1042_v47 = vld [vmem:[%s2517_s18 + $0x7d8] sm:$0xff]  ;;  %v911_v51 = vld [vmem:[%s2517_s18 + $0x3c0] sm:$0xff]  ;;  %v789_v7 = vld [vmem:[%s2851_s0 + $0x30] sm:$0xff] }
  0xec   : > { %1712 = vmatpush1.bf16.msra.mxu0 %v1711_v43  ;;  %1586 = vmatprep.subr.bf16.mxu1 %v1585_v44  ;;  %v887_v43 = vld [vmem:[%s2517_s18 + $0x300] sm:$0xff]  ;;  %v889_v44 = vld [vmem:[%s2517_s18 + $0x310] sm:$0xff]  ;;  %v918_v57 = vld [vmem:[%s2517_s18 + $0x3f8] sm:$0xff] }
  0xed   : > { %1714 = vmatprep.subr.bf16.mxu0 %v1713_v48  ;;  %v892_v48 = vld [vmem:[%s2517_s18 + $0x328] sm:$0xff]  ;;  %v1607_v52 = vpack.c.bf16 %v889_v44, %v887_v43  ;;  %v1037_v43 = vld [vmem:[%s2517_s18 + $0x7b0] sm:$0xff]  ;;  %v1046_v59 = vld [vmem:[%s2517_s18 + $0x7f8] sm:$0xff] }
  0xee   : > { %v912_v44 = vld [vmem:[%s2517_s18 + $0x3c8] sm:$0xff]  ;;  %v915_v63 = vld [vmem:[%s2517_s18 + $0x3e0] sm:$0xff] }
  0xef   : > { %1588 = vmatpush1.bf16.msra.mxu1 %v1587_v54  ;;  %v1609_v54 = vpack.c.bf16 %v894_v49, %v892_v48  ;;  %v1629_v50 = vpack.c.bf16 %v914_v45, %v912_v44 }
  0xf0   : > { %1716 = vmatpush1.bf16.msra.mxu0 %v1715_v55  ;;  %1590 = vmatprep.subr.bf16.mxu1 %v1589_v56  ;;  %v891_v55 = vld [vmem:[%s2517_s18 + $0x320] sm:$0xff]  ;;  %v893_v56 = vld [vmem:[%s2517_s18 + $0x330] sm:$0xff] }
  0xf1   : > { %1718 = vmatprep.subr.bf16.mxu0 %v1717_v60  ;;  %v896_v60 = vld [vmem:[%s2517_s18 + $0x348] sm:$0xff]  ;;  %v1611_v0 = vpack.c.bf16 %v893_v56, %v891_v55  ;;  %v1041_v55 = vld [vmem:[%s2517_s18 + $0x7d0] sm:$0xff] }
  0xf2   : > { %v916_v56 = vld [vmem:[%s2517_s18 + $0x3e8] sm:$0xff] }
  0xf3   : > { %1592 = vmatpush1.bf16.msra.mxu1 %v1591_v2  ;;  %v1613_v2 = vpack.c.bf16 %v898_v61, %v896_v60  ;;  %v1633_v62 = vpack.c.bf16 %v918_v57, %v916_v56 }
  0xf4   : > { %1720 = vmatpush1.bf16.msra.mxu0 %v1719_v3  ;;  %1594 = vmatprep.subr.bf16.mxu1 %v1593_v4  ;;  %v895_v3 = vld [vmem:[%s2517_s18 + $0x340] sm:$0xff]  ;;  %v897_v4 = vld [vmem:[%s2517_s18 + $0x350] sm:$0xff] }
  0xf5   : > { %1722 = vmatprep.subr.bf16.mxu0 %v1721_v8  ;;  %v900_v8 = vld [vmem:[%s2517_s18 + $0x368] sm:$0xff]  ;;  %v1615_v12 = vpack.c.bf16 %v897_v4, %v895_v3  ;;  %v1045_v3 = vld [vmem:[%s2517_s18 + $0x7f0] sm:$0xff] }
  0xf7   : > { %1596 = vmatpush1.bf16.msra.mxu1 %v1595_v14  ;;  %v1617_v14 = vpack.c.bf16 %v902_v9, %v900_v8  ;;  %v1337_v8 = vlaneseq }
  0xf8   : > { %1724 = vmatpush1.bf16.msra.mxu0 %v1723_v17  ;;  %1598 = vmatprep.subr.bf16.mxu1 %v1597_v18  ;;  %v1027_v17 = vld [vmem:[%s2517_s18 + $0x760] sm:$0xff]  ;;  %v1745_v18 = vpack.c.bf16 %v1030_v11, %v1028_v10 }
  0xf9   : > { %1726 = vmatprep.subr.bf16.mxu0 %v1725_v22  ;;  %v1032_v22 = vld [vmem:[%s2517_s18 + $0x788] sm:$0xff]  ;;  %v1747_v25 = vpack.c.bf16 %v1029_v19, %v1027_v17  ;;  %v1338_v9 = vshrl.u32 %v1337_v8, 7 }
  0xfb   : > { %1600 = vmatpush1.bf16.msra.mxu1 %v1599_v28  ;;  %v905_v28 = vld [vmem:[%s2517_s18 + $0x390] sm:$0xff]  ;;  %v1339_v10 = vsub.s32 0, %v1338_v9 }
  0xfc   : > { %1728 = vmatpush1.bf16.msra.mxu0 %v1727_v29  ;;  %1602 = vmatprep.subr.bf16.mxu1 %v1601_v30  ;;  %v1031_v29 = vld [vmem:[%s2517_s18 + $0x780] sm:$0xff]  ;;  %v1749_v30 = vpack.c.bf16 %v1034_v23, %v1032_v22  ;;  %v1623_v36 = vpack.c.bf16 %v905_v28, %v903_v27 }
  0xfd   : > { %1730 = vmatprep.subr.bf16.mxu0 %v1729_v34  ;;  %v1036_v34 = vld [vmem:[%s2517_s18 + $0x7a8] sm:$0xff]  ;;  %v1751_v37 = vpack.c.bf16 %v1033_v31, %v1031_v29 }
  0xff   : > { %1604 = vmatpush1.bf16.msra.mxu1 %v1603_v40  ;;  %v909_v40 = vld [vmem:[%s2517_s18 + $0x3b0] sm:$0xff] }
 0x100   : > { %1732 = vmatpush1.bf16.msra.mxu0 %v1731_v41  ;;  %1606 = vmatprep.subr.bf16.mxu1 %v1605_v42  ;;  %v1035_v41 = vld [vmem:[%s2517_s18 + $0x7a0] sm:$0xff]  ;;  %v1753_v42 = vpack.c.bf16 %v1038_v35, %v1036_v34  ;;  %v1627_v48 = vpack.c.bf16 %v909_v40, %v907_v39 }
 0x101   : > { %1734 = vmatprep.subr.bf16.mxu0 %v1733_v46  ;;  %v1040_v46 = vld [vmem:[%s2517_s18 + $0x7c8] sm:$0xff]  ;;  %v1755_v49 = vpack.c.bf16 %v1037_v43, %v1035_v41 }
 0x103   : > { %1608 = vmatpush1.bf16.msra.mxu1 %v1607_v52  ;;  %v913_v52 = vld [vmem:[%s2517_s18 + $0x3d0] sm:$0xff] }
 0x104   : > { %1736 = vmatpush1.bf16.msra.mxu0 %v1735_v53  ;;  %1610 = vmatprep.subr.bf16.mxu1 %v1609_v54  ;;  %v1039_v53 = vld [vmem:[%s2517_s18 + $0x7c0] sm:$0xff]  ;;  %v1757_v54 = vpack.c.bf16 %v1042_v47, %v1040_v46  ;;  %v1631_v60 = vpack.c.bf16 %v913_v52, %v911_v51 }
 0x105   : > { %1738 = vmatprep.subr.bf16.mxu0 %v1737_v58  ;;  %v1044_v58 = vld [vmem:[%s2517_s18 + $0x7e8] sm:$0xff]  ;;  %v1759_v61 = vpack.c.bf16 %v1041_v55, %v1039_v53 }
 0x107   : > { %1612 = vmatpush1.bf16.msra.mxu1 %v1611_v0  ;;  %v917_v0 = vld [vmem:[%s2517_s18 + $0x3f0] sm:$0xff] }
 0x108   : > { %1740 = vmatpush1.bf16.msra.mxu0 %v1739_v1  ;;  %1614 = vmatprep.subr.bf16.mxu1 %v1613_v2  ;;  %v1761_v1 = vpack.c.bf16 %v1046_v59, %v1044_v58  ;;  %v1043_v2 = vld [vmem:[%s2517_s18 + $0x7e0] sm:$0xff]  ;;  %v1635_v4 = vpack.c.bf16 %v917_v0, %v915_v63  ;;  %s780_s18 = scalar_lea.vmem %s2853_s2, %s2865_s9 }
 0x109   : > { %1742 = vmatprep.subr.bf16.mxu0 %v1741_v6  ;;  %v1763_v5 = vpack.c.bf16 %v1045_v3, %v1043_v2  ;;  %v785_v6 = vld [vmem:[%s2851_s0 + $0x10] sm:$0xff]  ;;  %v1335_v11 = vld [vmem:[%s780_s18] sm:$0x3] }
 0x10b   : > { %1616 = vmatpush1.bf16.msra.mxu1 %v1615_v12  ;;  %v1343_v12 = vsub.s32 1, %v1338_v9 }
 0x10c   : > { %1744 = vmatpush1.bf16.msra.mxu0 %v1743_v13  ;;  %1618 = vmatprep.subr.bf16.mxu1 %v1617_v14  ;;  %v1340_v14 = vrot.slane %v1335_v11, %v1339_v10 }
 0x10d   : > { %1746 = vmatprep.subr.bf16.mxu0 %v1745_v18  ;;  %v1344_v17 = vrot.slane %v1335_v11, %v1343_v12 }
 0x10f   : > { %1620 = vmatpush1.bf16.msra.mxu1 %v1619_v24 }
 0x110   : > { %1748 = vmatpush1.bf16.msra.mxu0 %v1747_v25  ;;  %1622 = vmatprep.subr.bf16.mxu1 %v1621_v26 }
 0x111   : > { %1750 = vmatprep.subr.bf16.mxu0 %v1749_v30 }
 0x113   : > { %1624 = vmatpush1.bf16.msra.mxu1 %v1623_v36 }
 0x114   : > { %1752 = vmatpush1.bf16.msra.mxu0 %v1751_v37  ;;  %1626 = vmatprep.subr.bf16.mxu1 %v1625_v38 }
 0x115   : > { %1754 = vmatprep.subr.bf16.mxu0 %v1753_v42 }
 0x117   : > { %1628 = vmatpush1.bf16.msra.mxu1 %v1627_v48 }
 0x118   : > { %1756 = vmatpush1.bf16.msra.mxu0 %v1755_v49  ;;  %1630 = vmatprep.subr.bf16.mxu1 %v1629_v50 }
 0x119   : > { %1758 = vmatprep.subr.bf16.mxu0 %v1757_v54 }
 0x11b   : > { %1632 = vmatpush1.bf16.msra.mxu1 %v1631_v60 }
 0x11c   : > { %1760 = vmatpush1.bf16.msra.mxu0 %v1759_v61  ;;  %1634 = vmatprep.subr.bf16.mxu1 %v1633_v62 }
 0x11d   : > { %1762 = vmatprep.subr.bf16.mxu0 %v1761_v1 }
 0x11f   : > { %1636 = vmatpush1.bf16.msra.mxu1 %v1635_v4 }
 0x120   : > { %1764 = vmatpush1.bf16.msra.mxu0 %v1763_v5 }
 0x122   : > { %1183 = vmatmul.mubr.f32.vlgmr.msra.gmra.mrb[0].mxu1 %v785_v6 }
 0x123   : > { %1325 = vmatmul.mubr.f32.vlgmr.msra.gmra.mrb[0].mxu0 %v789_v7 }
 0x1f5   : > { %v1184_v13 = vpop.f32.mrb[0].mxu1 }
 0x1f6   : > { %v1326_v15 = vpop.f32.mrb[0].mxu0  ;;  %v1186_v16 = vpop.f32.mrb[1].mxu1 }
 0x1f7   : > { %v1765_v18 = vadd.f32 %v1326_v15, %v1184_v13  ;;  %v1328_v19 = vpop.f32.mrb[1].mxu0 }
 0x1f8   : > { %v1766_v20 = vadd.f32 %v1328_v19, %v1186_v16 }
 0x1f9   : > { %v1347_v21 = vadd.f32 %v1765_v18, %v1340_v14 }
 0x1fa   : > { %v1348_v22 = vadd.f32 %v1766_v20, %v1344_v17 }
 0x1fb   : > { %1349 = vst [vmem:[%s764_s23] sm:$0xff] %v1347_v21 }
 0x1fc   : > { %1350 = vst [vmem:[%s764_s23 + $0x8] sm:$0xff] %v1348_v22 }
 0x1fd   : > { %1839 = shalt.err (!%p1836_p8)
}
 0x1fe   : > { %s1840_s6 = scalar_lea.hbm %s2802_s29, 256  ;;  %s1844_s10 = scalar_lea.hbm %s2854_s3, 512 }
 0x1ff   : > { %p1841_p11 = scmp.ne.s32.totalorder %s2802_s29, %s1840_s6  ;;  %p1845_p0 = scmp.lt.u32.totalorder %s2802_s29, %s2854_s3 }
 0x200   : > { %p1846_p1 = scmp.lt.u32.totalorder %s1844_s10, %s1840_s6  ;;  %p1848_p3 = scmp.lt.u32.totalorder %s1840_s6, %s2802_s29 }
 0x201   : > { %p1842_p12 = pnand %p1841_p11, %p1966_p5 }
 0x202   : > { %p1847_p2 = por %p1846_p1, %p1845_p0 }
 0x203   : > { %p1843_p13 = pneg %p1842_p12 }
 0x204   : > { %p1849_p4 = por %p1848_p3, %p1847_p2 }
 0x206   : > { %p1850_p6 = pnand %p1849_p4, %p1843_p13 }
 0x208   : > { %1853 = shalt.err (!%p1850_p6)
}
 0x209   : > { %1771 = dma.vmem_to_hbm [thread:$0]  (%p1966_p5), %s2804_s26, 256, %s2802_s29, %s1362_s30  }
 0x20a PF: > { %s1390_s19 = sand.u32 1, %s1884_s12   ;;  %p1774_p7 = pnand %p1494_p10, %p1977_p9 }
 0x20b   : > { %s1391_s21 = scalar_lea.sflag [#allocation4], %s1390_s19 }
 0x20c   : > { %1879 = dma.done.wait (!%p1774_p7), %s1391_s21, 256  }
 0x20d   : > { %1881 = vsyncadd (!%p1774_p7), %s1391_s21, 4294967040  ;;  %s16_s17 = sadd.s32 1, %s1904_s17   ;;  %s2857_s12 = smov %s1888_s13 }
 0x20e   : > { %p13_p8 = scmp.ge.s32.totalorder %s16_s17, 4   ;;  %s2858_s13 = smov %s1892_s14 }
 0x20f   : > { %s2859_s14 = smov %s1975_s24  ;;  %s2860_s15 = smov %s1900_s16 }
 0x210   : > { %s2861_s16 = smov %s2863_s20  ;;  %15 = sbr.rel (!%p13_p8) target bundleno = 4 (0x4), region = 109 }
 0x217   :  { %1396 = vsyncpa [#allocation4], 1 }
 0x218   :  { %1398 = vsyncpa [#allocation4 + $0x1], 1 }

</bundles_post_ra>
